<compile_context>
chip_gen: v5e
topology: v5e:2x2
jax: 0.10.0
libtpu: 0.0.40
codegen_flags: <defaults>
</compile_context>

<pallas_src>
import functools

import jax
import jax.numpy as jnp
from jax.experimental import pallas as pl
from jax.experimental.pallas import tpu as pltpu


def _embed_gather_kernel(ids_ref, table_hbm, out_ref, buf, sem, *, chunk):
    """Gather `chunk` embedding rows per grid step with a manual double buffer.

    ids_ref   : SMEM (N_pad,) int32   flat token ids (scalar prefetch)
    table_hbm : HBM  (V, D)           embedding table (raw ref, manual DMA)
    out_ref   : VMEM (chunk, D)       output tile for this grid step
    buf       : VMEM (2, chunk, D)    double buffer for gathered rows
    sem       : DMA sems (2, chunk)
    """
    c = pl.program_id(0)
    nc = pl.num_programs(0)

    def start_fetch(chunk_idx, slot):
        base = chunk_idx * chunk
        for t in range(chunk):                      # static unroll: chunk row DMAs
            tok = ids_ref[base + t]
            pltpu.make_async_copy(
                table_hbm.at[pl.ds(tok, 1)],        # (1, D) row in HBM
                buf.at[slot, pl.ds(t, 1)],          # (1, D) slot in VMEM
                sem.at[slot, t],
            ).start()

    slot = c % 2

    # Prime the pipeline on the very first grid step.
    @pl.when(c == 0)
    def _():
        start_fetch(0, 0)

    # Prefetch next chunk into the other slot while this chunk is in flight.
    @pl.when(c + 1 < nc)
    def _():
        start_fetch(c + 1, 1 - slot)

    # Wait for this chunk's rows, then one dense (chunk, D) store.
    for t in range(chunk):
        pltpu.make_async_copy(
            table_hbm.at[pl.ds(0, 1)],              # shape-only for the wait
            buf.at[slot, pl.ds(t, 1)],
            sem.at[slot, t],
        ).wait()

    out_ref[...] = buf[slot]


def embedding_lookup(table, ids, *, chunk=8):
    """table: (V, D) float; ids: int array of any shape -> ids.shape + (D,)."""
    V, D = table.shape
    orig_shape = ids.shape

    # Flatten, cast, and clamp ids (protects the manual DMA from OOB offsets;
    # matches "valid index" assumption of nn.Embedding).
    flat_ids = jnp.clip(ids.reshape(-1).astype(jnp.int32), 0, V - 1)
    N = flat_ids.shape[0]

    n_pad = pl.cdiv(N, chunk) * chunk
    if n_pad != N:
        flat_ids = jnp.pad(flat_ids, (0, n_pad - N))   # pad with id 0 (valid row)
    num_chunks = n_pad // chunk

    kernel = functools.partial(_embed_gather_kernel, chunk=chunk)
    itemsize = jnp.dtype(table.dtype).itemsize

    out_flat = pl.pallas_call(
        kernel,
        out_shape=jax.ShapeDtypeStruct((n_pad, D), table.dtype),
        grid_spec=pltpu.PrefetchScalarGridSpec(
            num_scalar_prefetch=1,                     # flat_ids lands in SMEM
            grid=(num_chunks,),                        # one step per chunk of tokens
            in_specs=[
                pl.BlockSpec(memory_space=pl.ANY),     # table stays in HBM
            ],
            out_specs=pl.BlockSpec((chunk, D), lambda i, _ids: (i, 0)),
            scratch_shapes=[
                pltpu.VMEM((2, chunk, D), table.dtype),
                pltpu.SemaphoreType.DMA((2, chunk)),
            ],
        ),
        compiler_params=pltpu.CompilerParams(
            # Sequential: the double buffer carries state across grid steps.
            dimension_semantics=("arbitrary",),
        ),
        cost_estimate=pl.CostEstimate(
            flops=0,
            transcendentals=0,
            bytes_accessed=n_pad * D * itemsize * 2 + n_pad * 4,
        ),
    )(flat_ids, table)

    return out_flat[:N].reshape(*orig_shape, D)


class EmbedModelPallas:
    """JAX/Pallas port of `embed_model` (non-BERT branch)."""

    def __init__(self, num_embeddings=50000, embedding_dim=512, key=None):
        if key is None:
            key = jax.random.PRNGKey(0)
        # torch.nn.Embedding default init: weight ~ N(0, 1)
        self.weight = jax.random.normal(
            key, (num_embeddings, embedding_dim), dtype=jnp.float32
        )

    def __call__(self, X):
        return embedding_lookup(self.weight, X)


if __name__ == "__main__":
    # Small, deterministic example shapes consistent with the forward pass.
    num_embeddings = 1024
    embedding_dim = 256
    batch, seq = 2, 8

    key = jax.random.PRNGKey(0)
    k_w, k_x, k_x2 = jax.random.split(key, 3)

    model = EmbedModelPallas(
        num_embeddings=num_embeddings, embedding_dim=embedding_dim, key=k_w
    )

    # Case 1: token count is a multiple of the chunk size.
    X = jax.random.randint(k_x, (batch, seq), 0, num_embeddings, dtype=jnp.int32)
    out = jax.block_until_ready(model(X))
    ref = model.weight[X]
    assert out.shape == (batch, seq, embedding_dim)
    assert jnp.allclose(out, ref)

    # Case 2: ragged token count (exercises the padding path).
    X2 = jax.random.randint(k_x2, (batch, 5), 0, num_embeddings, dtype=jnp.int32)
    out2 = jax.block_until_ready(model(X2))
    ref2 = model.weight[X2]
    assert out2.shape == (batch, 5, embedding_dim)
    assert jnp.allclose(out2, ref2)

    print("KERNEL_OK")
</pallas_src>

<mosaic_0001>
module attributes {stable_mosaic.version = 11 : i64} {
  func.func @_embed_gather_kernel(%arg0: i32, %arg1: memref<16xi32, #tpu.memory_space<smem>>, %arg2: memref<1024x256xf32, #tpu.memory_space<any>>, %arg3: memref<8x256xf32, #tpu.memory_space<vmem>>, %arg4: memref<2x8x256xf32, #tpu.memory_space<vmem>>, %arg5: memref<2x8x!tpu.dma_semaphore, #tpu.memory_space<semaphore_mem>>) attributes {dimension_semantics = [#tpu.dimension_semantics<arbitrary>], iteration_bounds = array<i64: 2>, scalar_prefetch = 1 : i64, scratch_operands = 2 : i64, tpu.core_type = #tpu.core_type<tc>, window_params = [{}, {transform_indices = @transform_1, window_bounds = array<i64: 8, 256>}]} {
    %c2_i32 = arith.constant 2 : i32
    %c0_i32 = arith.constant 0 : i32
    %0 = arith.cmpi eq, %c2_i32, %c0_i32 : i32
    %c1_i32 = arith.constant 1 : i32
    %1 = arith.select %0, %c1_i32, %c2_i32 : i32
    %2 = arith.remsi %arg0, %1 : i32
    %c0_i32_0 = arith.constant 0 : i32
    %3 = arith.cmpi ne, %2, %c0_i32_0 : i32
    %c0_i32_1 = arith.constant 0 : i32
    %4 = arith.cmpi slt, %2, %c0_i32_1 : i32
    %c0_i32_2 = arith.constant 0 : i32
    %5 = arith.cmpi slt, %1, %c0_i32_2 : i32
    %6 = arith.xori %4, %5 : i1
    %7 = arith.andi %6, %3 : i1
    %8 = arith.addi %2, %1 : i32
    %9 = arith.select %7, %8, %2 : i32
    %c0_i32_3 = arith.constant 0 : i32
    %10 = arith.cmpi eq, %arg0, %c0_i32_3 : i32
    %11 = arith.extui %10 : i1 to i32
    %c0_i32_4 = arith.constant 0 : i32
    %12 = arith.cmpi ne, %11, %c0_i32_4 : i32
    scf.if %12 {
      %c0_46 = arith.constant 0 : index
      %61 = memref.load %arg1[%c0_46] : memref<16xi32, #tpu.memory_space<smem>>
      %c0_i32_47 = arith.constant 0 : i32
      %c0_i32_48 = arith.constant 0 : i32
      %c0_i32_49 = arith.constant 0 : i32
      %c0_i32_50 = arith.constant 0 : i32
      %62 = tpu.memref_slice %arg2[%61, %c0_i32_50] : memref<1024x256xf32, #tpu.memory_space<any>> -> memref<1x256xf32, #tpu.memory_space<any>>
      %c0_i32_51 = arith.constant 0 : i32
      %c0_i32_52 = arith.constant 0 : i32
      %63 = tpu.memref_slice %arg4[%c0_i32_47, %c0_i32_51, %c0_i32_52] : memref<2x8x256xf32, #tpu.memory_space<vmem>> -> memref<1x1x256xf32, #tpu.memory_space<vmem>>
      %64 = tpu.memref_squeeze %63 : memref<1x1x256xf32, #tpu.memory_space<vmem>> -> memref<1x256xf32, #tpu.memory_space<vmem>>
      %65 = tpu.memref_slice %arg5[%c0_i32_48, %c0_i32_49] : memref<2x8x!tpu.dma_semaphore, #tpu.memory_space<semaphore_mem>> -> memref<1x1x!tpu.dma_semaphore, #tpu.memory_space<semaphore_mem>>
      %66 = tpu.memref_squeeze %65 : memref<1x1x!tpu.dma_semaphore, #tpu.memory_space<semaphore_mem>> -> memref<!tpu.dma_semaphore, #tpu.memory_space<semaphore_mem>>
      tpu.enqueue_dma source(%62 : memref<1x256xf32, #tpu.memory_space<any>>) target(%64 : memref<1x256xf32, #tpu.memory_space<vmem>>) target_semaphore(%66 : memref<!tpu.dma_semaphore, #tpu.memory_space<semaphore_mem>>)
      %c1 = arith.constant 1 : index
      %67 = memref.load %arg1[%c1] : memref<16xi32, #tpu.memory_space<smem>>
      %c0_i32_53 = arith.constant 0 : i32
      %c0_i32_54 = arith.constant 0 : i32
      %c1_i32_55 = arith.constant 1 : i32
      %c0_i32_56 = arith.constant 0 : i32
      %68 = tpu.memref_slice %arg2[%67, %c0_i32_56] : memref<1024x256xf32, #tpu.memory_space<any>> -> memref<1x256xf32, #tpu.memory_space<any>>
      %c1_i32_57 = arith.constant 1 : i32
      %c0_i32_58 = arith.constant 0 : i32
      %69 = tpu.memref_slice %arg4[%c0_i32_53, %c1_i32_57, %c0_i32_58] : memref<2x8x256xf32, #tpu.memory_space<vmem>> -> memref<1x1x256xf32, #tpu.memory_space<vmem>>
      %70 = tpu.memref_squeeze %69 : memref<1x1x256xf32, #tpu.memory_space<vmem>> -> memref<1x256xf32, #tpu.memory_space<vmem>>
      %71 = tpu.memref_slice %arg5[%c0_i32_54, %c1_i32_55] : memref<2x8x!tpu.dma_semaphore, #tpu.memory_space<semaphore_mem>> -> memref<1x1x!tpu.dma_semaphore, #tpu.memory_space<semaphore_mem>>
      %72 = tpu.memref_squeeze %71 : memref<1x1x!tpu.dma_semaphore, #tpu.memory_space<semaphore_mem>> -> memref<!tpu.dma_semaphore, #tpu.memory_space<semaphore_mem>>
      tpu.enqueue_dma source(%68 : memref<1x256xf32, #tpu.memory_space<any>>) target(%70 : memref<1x256xf32, #tpu.memory_space<vmem>>) target_semaphore(%72 : memref<!tpu.dma_semaphore, #tpu.memory_space<semaphore_mem>>)
      %c2 = arith.constant 2 : index
      %73 = memref.load %arg1[%c2] : memref<16xi32, #tpu.memory_space<smem>>
      %c0_i32_59 = arith.constant 0 : i32
      %c0_i32_60 = arith.constant 0 : i32
      %c2_i32_61 = arith.constant 2 : i32
      %c0_i32_62 = arith.constant 0 : i32
      %74 = tpu.memref_slice %arg2[%73, %c0_i32_62] : memref<1024x256xf32, #tpu.memory_space<any>> -> memref<1x256xf32, #tpu.memory_space<any>>
      %c2_i32_63 = arith.constant 2 : i32
      %c0_i32_64 = arith.constant 0 : i32
      %75 = tpu.memref_slice %arg4[%c0_i32_59, %c2_i32_63, %c0_i32_64] : memref<2x8x256xf32, #tpu.memory_space<vmem>> -> memref<1x1x256xf32, #tpu.memory_space<vmem>>
      %76 = tpu.memref_squeeze %75 : memref<1x1x256xf32, #tpu.memory_space<vmem>> -> memref<1x256xf32, #tpu.memory_space<vmem>>
      %77 = tpu.memref_slice %arg5[%c0_i32_60, %c2_i32_61] : memref<2x8x!tpu.dma_semaphore, #tpu.memory_space<semaphore_mem>> -> memref<1x1x!tpu.dma_semaphore, #tpu.memory_space<semaphore_mem>>
      %78 = tpu.memref_squeeze %77 : memref<1x1x!tpu.dma_semaphore, #tpu.memory_space<semaphore_mem>> -> memref<!tpu.dma_semaphore, #tpu.memory_space<semaphore_mem>>
      tpu.enqueue_dma source(%74 : memref<1x256xf32, #tpu.memory_space<any>>) target(%76 : memref<1x256xf32, #tpu.memory_space<vmem>>) target_semaphore(%78 : memref<!tpu.dma_semaphore, #tpu.memory_space<semaphore_mem>>)
      %c3 = arith.constant 3 : index
      %79 = memref.load %arg1[%c3] : memref<16xi32, #tpu.memory_space<smem>>
      %c0_i32_65 = arith.constant 0 : i32
      %c0_i32_66 = arith.constant 0 : i32
      %c3_i32_67 = arith.constant 3 : i32
      %c0_i32_68 = arith.constant 0 : i32
      %80 = tpu.memref_slice %arg2[%79, %c0_i32_68] : memref<1024x256xf32, #tpu.memory_space<any>> -> memref<1x256xf32, #tpu.memory_space<any>>
      %c3_i32_69 = arith.constant 3 : i32
      %c0_i32_70 = arith.constant 0 : i32
      %81 = tpu.memref_slice %arg4[%c0_i32_65, %c3_i32_69, %c0_i32_70] : memref<2x8x256xf32, #tpu.memory_space<vmem>> -> memref<1x1x256xf32, #tpu.memory_space<vmem>>
      %82 = tpu.memref_squeeze %81 : memref<1x1x256xf32, #tpu.memory_space<vmem>> -> memref<1x256xf32, #tpu.memory_space<vmem>>
      %83 = tpu.memref_slice %arg5[%c0_i32_66, %c3_i32_67] : memref<2x8x!tpu.dma_semaphore, #tpu.memory_space<semaphore_mem>> -> memref<1x1x!tpu.dma_semaphore, #tpu.memory_space<semaphore_mem>>
      %84 = tpu.memref_squeeze %83 : memref<1x1x!tpu.dma_semaphore, #tpu.memory_space<semaphore_mem>> -> memref<!tpu.dma_semaphore, #tpu.memory_space<semaphore_mem>>
      tpu.enqueue_dma source(%80 : memref<1x256xf32, #tpu.memory_space<any>>) target(%82 : memref<1x256xf32, #tpu.memory_space<vmem>>) target_semaphore(%84 : memref<!tpu.dma_semaphore, #tpu.memory_space<semaphore_mem>>)
      %c4 = arith.constant 4 : index
      %85 = memref.load %arg1[%c4] : memref<16xi32, #tpu.memory_space<smem>>
      %c0_i32_71 = arith.constant 0 : i32
      %c0_i32_72 = arith.constant 0 : i32
      %c4_i32_73 = arith.constant 4 : i32
      %c0_i32_74 = arith.constant 0 : i32
      %86 = tpu.memref_slice %arg2[%85, %c0_i32_74] : memref<1024x256xf32, #tpu.memory_space<any>> -> memref<1x256xf32, #tpu.memory_space<any>>
      %c4_i32_75 = arith.constant 4 : i32
      %c0_i32_76 = arith.constant 0 : i32
      %87 = tpu.memref_slice %arg4[%c0_i32_71, %c4_i32_75, %c0_i32_76] : memref<2x8x256xf32, #tpu.memory_space<vmem>> -> memref<1x1x256xf32, #tpu.memory_space<vmem>>
      %88 = tpu.memref_squeeze %87 : memref<1x1x256xf32, #tpu.memory_space<vmem>> -> memref<1x256xf32, #tpu.memory_space<vmem>>
      %89 = tpu.memref_slice %arg5[%c0_i32_72, %c4_i32_73] : memref<2x8x!tpu.dma_semaphore, #tpu.memory_space<semaphore_mem>> -> memref<1x1x!tpu.dma_semaphore, #tpu.memory_space<semaphore_mem>>
      %90 = tpu.memref_squeeze %89 : memref<1x1x!tpu.dma_semaphore, #tpu.memory_space<semaphore_mem>> -> memref<!tpu.dma_semaphore, #tpu.memory_space<semaphore_mem>>
      tpu.enqueue_dma source(%86 : memref<1x256xf32, #tpu.memory_space<any>>) target(%88 : memref<1x256xf32, #tpu.memory_space<vmem>>) target_semaphore(%90 : memref<!tpu.dma_semaphore, #tpu.memory_space<semaphore_mem>>)
      %c5 = arith.constant 5 : index
      %91 = memref.load %arg1[%c5] : memref<16xi32, #tpu.memory_space<smem>>
      %c0_i32_77 = arith.constant 0 : i32
      %c0_i32_78 = arith.constant 0 : i32
      %c5_i32_79 = arith.constant 5 : i32
      %c0_i32_80 = arith.constant 0 : i32
      %92 = tpu.memref_slice %arg2[%91, %c0_i32_80] : memref<1024x256xf32, #tpu.memory_space<any>> -> memref<1x256xf32, #tpu.memory_space<any>>
      %c5_i32_81 = arith.constant 5 : i32
      %c0_i32_82 = arith.constant 0 : i32
      %93 = tpu.memref_slice %arg4[%c0_i32_77, %c5_i32_81, %c0_i32_82] : memref<2x8x256xf32, #tpu.memory_space<vmem>> -> memref<1x1x256xf32, #tpu.memory_space<vmem>>
      %94 = tpu.memref_squeeze %93 : memref<1x1x256xf32, #tpu.memory_space<vmem>> -> memref<1x256xf32, #tpu.memory_space<vmem>>
      %95 = tpu.memref_slice %arg5[%c0_i32_78, %c5_i32_79] : memref<2x8x!tpu.dma_semaphore, #tpu.memory_space<semaphore_mem>> -> memref<1x1x!tpu.dma_semaphore, #tpu.memory_space<semaphore_mem>>
      %96 = tpu.memref_squeeze %95 : memref<1x1x!tpu.dma_semaphore, #tpu.memory_space<semaphore_mem>> -> memref<!tpu.dma_semaphore, #tpu.memory_space<semaphore_mem>>
      tpu.enqueue_dma source(%92 : memref<1x256xf32, #tpu.memory_space<any>>) target(%94 : memref<1x256xf32, #tpu.memory_space<vmem>>) target_semaphore(%96 : memref<!tpu.dma_semaphore, #tpu.memory_space<semaphore_mem>>)
      %c6 = arith.constant 6 : index
      %97 = memref.load %arg1[%c6] : memref<16xi32, #tpu.memory_space<smem>>
      %c0_i32_83 = arith.constant 0 : i32
      %c0_i32_84 = arith.constant 0 : i32
      %c6_i32_85 = arith.constant 6 : i32
      %c0_i32_86 = arith.constant 0 : i32
      %98 = tpu.memref_slice %arg2[%97, %c0_i32_86] : memref<1024x256xf32, #tpu.memory_space<any>> -> memref<1x256xf32, #tpu.memory_space<any>>
      %c6_i32_87 = arith.constant 6 : i32
      %c0_i32_88 = arith.constant 0 : i32
      %99 = tpu.memref_slice %arg4[%c0_i32_83, %c6_i32_87, %c0_i32_88] : memref<2x8x256xf32, #tpu.memory_space<vmem>> -> memref<1x1x256xf32, #tpu.memory_space<vmem>>
      %100 = tpu.memref_squeeze %99 : memref<1x1x256xf32, #tpu.memory_space<vmem>> -> memref<1x256xf32, #tpu.memory_space<vmem>>
      %101 = tpu.memref_slice %arg5[%c0_i32_84, %c6_i32_85] : memref<2x8x!tpu.dma_semaphore, #tpu.memory_space<semaphore_mem>> -> memref<1x1x!tpu.dma_semaphore, #tpu.memory_space<semaphore_mem>>
      %102 = tpu.memref_squeeze %101 : memref<1x1x!tpu.dma_semaphore, #tpu.memory_space<semaphore_mem>> -> memref<!tpu.dma_semaphore, #tpu.memory_space<semaphore_mem>>
      tpu.enqueue_dma source(%98 : memref<1x256xf32, #tpu.memory_space<any>>) target(%100 : memref<1x256xf32, #tpu.memory_space<vmem>>) target_semaphore(%102 : memref<!tpu.dma_semaphore, #tpu.memory_space<semaphore_mem>>)
      %c7 = arith.constant 7 : index
      %103 = memref.load %arg1[%c7] : memref<16xi32, #tpu.memory_space<smem>>
      %c0_i32_89 = arith.constant 0 : i32
      %c0_i32_90 = arith.constant 0 : i32
      %c7_i32_91 = arith.constant 7 : i32
      %c0_i32_92 = arith.constant 0 : i32
      %104 = tpu.memref_slice %arg2[%103, %c0_i32_92] : memref<1024x256xf32, #tpu.memory_space<any>> -> memref<1x256xf32, #tpu.memory_space<any>>
      %c7_i32_93 = arith.constant 7 : i32
      %c0_i32_94 = arith.constant 0 : i32
      %105 = tpu.memref_slice %arg4[%c0_i32_89, %c7_i32_93, %c0_i32_94] : memref<2x8x256xf32, #tpu.memory_space<vmem>> -> memref<1x1x256xf32, #tpu.memory_space<vmem>>
      %106 = tpu.memref_squeeze %105 : memref<1x1x256xf32, #tpu.memory_space<vmem>> -> memref<1x256xf32, #tpu.memory_space<vmem>>
      %107 = tpu.memref_slice %arg5[%c0_i32_90, %c7_i32_91] : memref<2x8x!tpu.dma_semaphore, #tpu.memory_space<semaphore_mem>> -> memref<1x1x!tpu.dma_semaphore, #tpu.memory_space<semaphore_mem>>
      %108 = tpu.memref_squeeze %107 : memref<1x1x!tpu.dma_semaphore, #tpu.memory_space<semaphore_mem>> -> memref<!tpu.dma_semaphore, #tpu.memory_space<semaphore_mem>>
      tpu.enqueue_dma source(%104 : memref<1x256xf32, #tpu.memory_space<any>>) target(%106 : memref<1x256xf32, #tpu.memory_space<vmem>>) target_semaphore(%108 : memref<!tpu.dma_semaphore, #tpu.memory_space<semaphore_mem>>)
    } else {
    }
    %c1_i32_5 = arith.constant 1 : i32
    %13 = arith.addi %arg0, %c1_i32_5 : i32
    %c2_i32_6 = arith.constant 2 : i32
    %14 = arith.cmpi slt, %13, %c2_i32_6 : i32
    %15 = arith.extui %14 : i1 to i32
    %c0_i32_7 = arith.constant 0 : i32
    %16 = arith.cmpi ne, %15, %c0_i32_7 : i32
    scf.if %16 {
      %c1_i32_46 = arith.constant 1 : i32
      %61 = arith.addi %arg0, %c1_i32_46 : i32
      %c1_i32_47 = arith.constant 1 : i32
      %62 = arith.subi %c1_i32_47, %9 : i32
      %c8_i32 = arith.constant 8 : i32
      %63 = arith.muli %61, %c8_i32 : i32
      %c0_i32_48 = arith.constant 0 : i32
      %64 = arith.addi %63, %c0_i32_48 : i32
      %65 = arith.index_cast %64 : i32 to index
      %66 = memref.load %arg1[%65] : memref<16xi32, #tpu.memory_space<smem>>
      %c0_i32_49 = arith.constant 0 : i32
      %c0_i32_50 = arith.constant 0 : i32
      %67 = tpu.memref_slice %arg2[%66, %c0_i32_50] : memref<1024x256xf32, #tpu.memory_space<any>> -> memref<1x256xf32, #tpu.memory_space<any>>
      %c0_i32_51 = arith.constant 0 : i32
      %c0_i32_52 = arith.constant 0 : i32
      %68 = tpu.memref_slice %arg4[%62, %c0_i32_51, %c0_i32_52] : memref<2x8x256xf32, #tpu.memory_space<vmem>> -> memref<1x1x256xf32, #tpu.memory_space<vmem>>
      %69 = tpu.memref_squeeze %68 : memref<1x1x256xf32, #tpu.memory_space<vmem>> -> memref<1x256xf32, #tpu.memory_space<vmem>>
      %70 = tpu.memref_slice %arg5[%62, %c0_i32_49] : memref<2x8x!tpu.dma_semaphore, #tpu.memory_space<semaphore_mem>> -> memref<1x1x!tpu.dma_semaphore, #tpu.memory_space<semaphore_mem>>
      %71 = tpu.memref_squeeze %70 : memref<1x1x!tpu.dma_semaphore, #tpu.memory_space<semaphore_mem>> -> memref<!tpu.dma_semaphore, #tpu.memory_space<semaphore_mem>>
      tpu.enqueue_dma source(%67 : memref<1x256xf32, #tpu.memory_space<any>>) target(%69 : memref<1x256xf32, #tpu.memory_space<vmem>>) target_semaphore(%71 : memref<!tpu.dma_semaphore, #tpu.memory_space<semaphore_mem>>)
      %c1_i32_53 = arith.constant 1 : i32
      %72 = arith.addi %63, %c1_i32_53 : i32
      %73 = arith.index_cast %72 : i32 to index
      %74 = memref.load %arg1[%73] : memref<16xi32, #tpu.memory_space<smem>>
      %c1_i32_54 = arith.constant 1 : i32
      %c0_i32_55 = arith.constant 0 : i32
      %75 = tpu.memref_slice %arg2[%74, %c0_i32_55] : memref<1024x256xf32, #tpu.memory_space<any>> -> memref<1x256xf32, #tpu.memory_space<any>>
      %c1_i32_56 = arith.constant 1 : i32
      %c0_i32_57 = arith.constant 0 : i32
      %76 = tpu.memref_slice %arg4[%62, %c1_i32_56, %c0_i32_57] : memref<2x8x256xf32, #tpu.memory_space<vmem>> -> memref<1x1x256xf32, #tpu.memory_space<vmem>>
      %77 = tpu.memref_squeeze %76 : memref<1x1x256xf32, #tpu.memory_space<vmem>> -> memref<1x256xf32, #tpu.memory_space<vmem>>
      %78 = tpu.memref_slice %arg5[%62, %c1_i32_54] : memref<2x8x!tpu.dma_semaphore, #tpu.memory_space<semaphore_mem>> -> memref<1x1x!tpu.dma_semaphore, #tpu.memory_space<semaphore_mem>>
      %79 = tpu.memref_squeeze %78 : memref<1x1x!tpu.dma_semaphore, #tpu.memory_space<semaphore_mem>> -> memref<!tpu.dma_semaphore, #tpu.memory_space<semaphore_mem>>
      tpu.enqueue_dma source(%75 : memref<1x256xf32, #tpu.memory_space<any>>) target(%77 : memref<1x256xf32, #tpu.memory_space<vmem>>) target_semaphore(%79 : memref<!tpu.dma_semaphore, #tpu.memory_space<semaphore_mem>>)
      %c2_i32_58 = arith.constant 2 : i32
      %80 = arith.addi %63, %c2_i32_58 : i32
      %81 = arith.index_cast %80 : i32 to index
      %82 = memref.load %arg1[%81] : memref<16xi32, #tpu.memory_space<smem>>
      %c2_i32_59 = arith.constant 2 : i32
      %c0_i32_60 = arith.constant 0 : i32
      %83 = tpu.memref_slice %arg2[%82, %c0_i32_60] : memref<1024x256xf32, #tpu.memory_space<any>> -> memref<1x256xf32, #tpu.memory_space<any>>
      %c2_i32_61 = arith.constant 2 : i32
      %c0_i32_62 = arith.constant 0 : i32
      %84 = tpu.memref_slice %arg4[%62, %c2_i32_61, %c0_i32_62] : memref<2x8x256xf32, #tpu.memory_space<vmem>> -> memref<1x1x256xf32, #tpu.memory_space<vmem>>
      %85 = tpu.memref_squeeze %84 : memref<1x1x256xf32, #tpu.memory_space<vmem>> -> memref<1x256xf32, #tpu.memory_space<vmem>>
      %86 = tpu.memref_slice %arg5[%62, %c2_i32_59] : memref<2x8x!tpu.dma_semaphore, #tpu.memory_space<semaphore_mem>> -> memref<1x1x!tpu.dma_semaphore, #tpu.memory_space<semaphore_mem>>
      %87 = tpu.memref_squeeze %86 : memref<1x1x!tpu.dma_semaphore, #tpu.memory_space<semaphore_mem>> -> memref<!tpu.dma_semaphore, #tpu.memory_space<semaphore_mem>>
      tpu.enqueue_dma source(%83 : memref<1x256xf32, #tpu.memory_space<any>>) target(%85 : memref<1x256xf32, #tpu.memory_space<vmem>>) target_semaphore(%87 : memref<!tpu.dma_semaphore, #tpu.memory_space<semaphore_mem>>)
      %c3_i32_63 = arith.constant 3 : i32
      %88 = arith.addi %63, %c3_i32_63 : i32
      %89 = arith.index_cast %88 : i32 to index
      %90 = memref.load %arg1[%89] : memref<16xi32, #tpu.memory_space<smem>>
      %c3_i32_64 = arith.constant 3 : i32
      %c0_i32_65 = arith.constant 0 : i32
      %91 = tpu.memref_slice %arg2[%90, %c0_i32_65] : memref<1024x256xf32, #tpu.memory_space<any>> -> memref<1x256xf32, #tpu.memory_space<any>>
      %c3_i32_66 = arith.constant 3 : i32
      %c0_i32_67 = arith.constant 0 : i32
      %92 = tpu.memref_slice %arg4[%62, %c3_i32_66, %c0_i32_67] : memref<2x8x256xf32, #tpu.memory_space<vmem>> -> memref<1x1x256xf32, #tpu.memory_space<vmem>>
      %93 = tpu.memref_squeeze %92 : memref<1x1x256xf32, #tpu.memory_space<vmem>> -> memref<1x256xf32, #tpu.memory_space<vmem>>
      %94 = tpu.memref_slice %arg5[%62, %c3_i32_64] : memref<2x8x!tpu.dma_semaphore, #tpu.memory_space<semaphore_mem>> -> memref<1x1x!tpu.dma_semaphore, #tpu.memory_space<semaphore_mem>>
      %95 = tpu.memref_squeeze %94 : memref<1x1x!tpu.dma_semaphore, #tpu.memory_space<semaphore_mem>> -> memref<!tpu.dma_semaphore, #tpu.memory_space<semaphore_mem>>
      tpu.enqueue_dma source(%91 : memref<1x256xf32, #tpu.memory_space<any>>) target(%93 : memref<1x256xf32, #tpu.memory_space<vmem>>) target_semaphore(%95 : memref<!tpu.dma_semaphore, #tpu.memory_space<semaphore_mem>>)
      %c4_i32_68 = arith.constant 4 : i32
      %96 = arith.addi %63, %c4_i32_68 : i32
      %97 = arith.index_cast %96 : i32 to index
      %98 = memref.load %arg1[%97] : memref<16xi32, #tpu.memory_space<smem>>
      %c4_i32_69 = arith.constant 4 : i32
      %c0_i32_70 = arith.constant 0 : i32
      %99 = tpu.memref_slice %arg2[%98, %c0_i32_70] : memref<1024x256xf32, #tpu.memory_space<any>> -> memref<1x256xf32, #tpu.memory_space<any>>
      %c4_i32_71 = arith.constant 4 : i32
      %c0_i32_72 = arith.constant 0 : i32
      %100 = tpu.memref_slice %arg4[%62, %c4_i32_71, %c0_i32_72] : memref<2x8x256xf32, #tpu.memory_space<vmem>> -> memref<1x1x256xf32, #tpu.memory_space<vmem>>
      %101 = tpu.memref_squeeze %100 : memref<1x1x256xf32, #tpu.memory_space<vmem>> -> memref<1x256xf32, #tpu.memory_space<vmem>>
      %102 = tpu.memref_slice %arg5[%62, %c4_i32_69] : memref<2x8x!tpu.dma_semaphore, #tpu.memory_space<semaphore_mem>> -> memref<1x1x!tpu.dma_semaphore, #tpu.memory_space<semaphore_mem>>
      %103 = tpu.memref_squeeze %102 : memref<1x1x!tpu.dma_semaphore, #tpu.memory_space<semaphore_mem>> -> memref<!tpu.dma_semaphore, #tpu.memory_space<semaphore_mem>>
      tpu.enqueue_dma source(%99 : memref<1x256xf32, #tpu.memory_space<any>>) target(%101 : memref<1x256xf32, #tpu.memory_space<vmem>>) target_semaphore(%103 : memref<!tpu.dma_semaphore, #tpu.memory_space<semaphore_mem>>)
      %c5_i32_73 = arith.constant 5 : i32
      %104 = arith.addi %63, %c5_i32_73 : i32
      %105 = arith.index_cast %104 : i32 to index
      %106 = memref.load %arg1[%105] : memref<16xi32, #tpu.memory_space<smem>>
      %c5_i32_74 = arith.constant 5 : i32
      %c0_i32_75 = arith.constant 0 : i32
      %107 = tpu.memref_slice %arg2[%106, %c0_i32_75] : memref<1024x256xf32, #tpu.memory_space<any>> -> memref<1x256xf32, #tpu.memory_space<any>>
      %c5_i32_76 = arith.constant 5 : i32
      %c0_i32_77 = arith.constant 0 : i32
      %108 = tpu.memref_slice %arg4[%62, %c5_i32_76, %c0_i32_77] : memref<2x8x256xf32, #tpu.memory_space<vmem>> -> memref<1x1x256xf32, #tpu.memory_space<vmem>>
      %109 = tpu.memref_squeeze %108 : memref<1x1x256xf32, #tpu.memory_space<vmem>> -> memref<1x256xf32, #tpu.memory_space<vmem>>
      %110 = tpu.memref_slice %arg5[%62, %c5_i32_74] : memref<2x8x!tpu.dma_semaphore, #tpu.memory_space<semaphore_mem>> -> memref<1x1x!tpu.dma_semaphore, #tpu.memory_space<semaphore_mem>>
      %111 = tpu.memref_squeeze %110 : memref<1x1x!tpu.dma_semaphore, #tpu.memory_space<semaphore_mem>> -> memref<!tpu.dma_semaphore, #tpu.memory_space<semaphore_mem>>
      tpu.enqueue_dma source(%107 : memref<1x256xf32, #tpu.memory_space<any>>) target(%109 : memref<1x256xf32, #tpu.memory_space<vmem>>) target_semaphore(%111 : memref<!tpu.dma_semaphore, #tpu.memory_space<semaphore_mem>>)
      %c6_i32_78 = arith.constant 6 : i32
      %112 = arith.addi %63, %c6_i32_78 : i32
      %113 = arith.index_cast %112 : i32 to index
      %114 = memref.load %arg1[%113] : memref<16xi32, #tpu.memory_space<smem>>
      %c6_i32_79 = arith.constant 6 : i32
      %c0_i32_80 = arith.constant 0 : i32
      %115 = tpu.memref_slice %arg2[%114, %c0_i32_80] : memref<1024x256xf32, #tpu.memory_space<any>> -> memref<1x256xf32, #tpu.memory_space<any>>
      %c6_i32_81 = arith.constant 6 : i32
      %c0_i32_82 = arith.constant 0 : i32
      %116 = tpu.memref_slice %arg4[%62, %c6_i32_81, %c0_i32_82] : memref<2x8x256xf32, #tpu.memory_space<vmem>> -> memref<1x1x256xf32, #tpu.memory_space<vmem>>
      %117 = tpu.memref_squeeze %116 : memref<1x1x256xf32, #tpu.memory_space<vmem>> -> memref<1x256xf32, #tpu.memory_space<vmem>>
      %118 = tpu.memref_slice %arg5[%62, %c6_i32_79] : memref<2x8x!tpu.dma_semaphore, #tpu.memory_space<semaphore_mem>> -> memref<1x1x!tpu.dma_semaphore, #tpu.memory_space<semaphore_mem>>
      %119 = tpu.memref_squeeze %118 : memref<1x1x!tpu.dma_semaphore, #tpu.memory_space<semaphore_mem>> -> memref<!tpu.dma_semaphore, #tpu.memory_space<semaphore_mem>>
      tpu.enqueue_dma source(%115 : memref<1x256xf32, #tpu.memory_space<any>>) target(%117 : memref<1x256xf32, #tpu.memory_space<vmem>>) target_semaphore(%119 : memref<!tpu.dma_semaphore, #tpu.memory_space<semaphore_mem>>)
      %c7_i32_83 = arith.constant 7 : i32
      %120 = arith.addi %63, %c7_i32_83 : i32
      %121 = arith.index_cast %120 : i32 to index
      %122 = memref.load %arg1[%121] : memref<16xi32, #tpu.memory_space<smem>>
      %c7_i32_84 = arith.constant 7 : i32
      %c0_i32_85 = arith.constant 0 : i32
      %123 = tpu.memref_slice %arg2[%122, %c0_i32_85] : memref<1024x256xf32, #tpu.memory_space<any>> -> memref<1x256xf32, #tpu.memory_space<any>>
      %c7_i32_86 = arith.constant 7 : i32
      %c0_i32_87 = arith.constant 0 : i32
      %124 = tpu.memref_slice %arg4[%62, %c7_i32_86, %c0_i32_87] : memref<2x8x256xf32, #tpu.memory_space<vmem>> -> memref<1x1x256xf32, #tpu.memory_space<vmem>>
      %125 = tpu.memref_squeeze %124 : memref<1x1x256xf32, #tpu.memory_space<vmem>> -> memref<1x256xf32, #tpu.memory_space<vmem>>
      %126 = tpu.memref_slice %arg5[%62, %c7_i32_84] : memref<2x8x!tpu.dma_semaphore, #tpu.memory_space<semaphore_mem>> -> memref<1x1x!tpu.dma_semaphore, #tpu.memory_space<semaphore_mem>>
      %127 = tpu.memref_squeeze %126 : memref<1x1x!tpu.dma_semaphore, #tpu.memory_space<semaphore_mem>> -> memref<!tpu.dma_semaphore, #tpu.memory_space<semaphore_mem>>
      tpu.enqueue_dma source(%123 : memref<1x256xf32, #tpu.memory_space<any>>) target(%125 : memref<1x256xf32, #tpu.memory_space<vmem>>) target_semaphore(%127 : memref<!tpu.dma_semaphore, #tpu.memory_space<semaphore_mem>>)
    } else {
    }
    %c0_i32_8 = arith.constant 0 : i32
    %c0_i32_9 = arith.constant 0 : i32
    %c0_i32_10 = arith.constant 0 : i32
    %17 = tpu.memref_slice %arg2[%c0_i32_9, %c0_i32_10] : memref<1024x256xf32, #tpu.memory_space<any>> -> memref<1x256xf32, #tpu.memory_space<any>>
    %c0_i32_11 = arith.constant 0 : i32
    %c0_i32_12 = arith.constant 0 : i32
    %18 = tpu.memref_slice %arg4[%9, %c0_i32_11, %c0_i32_12] : memref<2x8x256xf32, #tpu.memory_space<vmem>> -> memref<1x1x256xf32, #tpu.memory_space<vmem>>
    %19 = tpu.memref_squeeze %18 : memref<1x1x256xf32, #tpu.memory_space<vmem>> -> memref<1x256xf32, #tpu.memory_space<vmem>>
    %20 = tpu.memref_slice %arg5[%9, %c0_i32_8] : memref<2x8x!tpu.dma_semaphore, #tpu.memory_space<semaphore_mem>> -> memref<1x1x!tpu.dma_semaphore, #tpu.memory_space<semaphore_mem>>
    %21 = tpu.memref_squeeze %20 : memref<1x1x!tpu.dma_semaphore, #tpu.memory_space<semaphore_mem>> -> memref<!tpu.dma_semaphore, #tpu.memory_space<semaphore_mem>>
    tpu.wait_dma2 semaphore(%21 : memref<!tpu.dma_semaphore, #tpu.memory_space<semaphore_mem>>) src(%17 : memref<1x256xf32, #tpu.memory_space<any>>) dst(%19 : memref<1x256xf32, #tpu.memory_space<vmem>>)
    %c1_i32_13 = arith.constant 1 : i32
    %c0_i32_14 = arith.constant 0 : i32
    %c0_i32_15 = arith.constant 0 : i32
    %22 = tpu.memref_slice %arg2[%c0_i32_14, %c0_i32_15] : memref<1024x256xf32, #tpu.memory_space<any>> -> memref<1x256xf32, #tpu.memory_space<any>>
    %c1_i32_16 = arith.constant 1 : i32
    %c0_i32_17 = arith.constant 0 : i32
    %23 = tpu.memref_slice %arg4[%9, %c1_i32_16, %c0_i32_17] : memref<2x8x256xf32, #tpu.memory_space<vmem>> -> memref<1x1x256xf32, #tpu.memory_space<vmem>>
    %24 = tpu.memref_squeeze %23 : memref<1x1x256xf32, #tpu.memory_space<vmem>> -> memref<1x256xf32, #tpu.memory_space<vmem>>
    %25 = tpu.memref_slice %arg5[%9, %c1_i32_13] : memref<2x8x!tpu.dma_semaphore, #tpu.memory_space<semaphore_mem>> -> memref<1x1x!tpu.dma_semaphore, #tpu.memory_space<semaphore_mem>>
    %26 = tpu.memref_squeeze %25 : memref<1x1x!tpu.dma_semaphore, #tpu.memory_space<semaphore_mem>> -> memref<!tpu.dma_semaphore, #tpu.memory_space<semaphore_mem>>
    tpu.wait_dma2 semaphore(%26 : memref<!tpu.dma_semaphore, #tpu.memory_space<semaphore_mem>>) src(%22 : memref<1x256xf32, #tpu.memory_space<any>>) dst(%24 : memref<1x256xf32, #tpu.memory_space<vmem>>)
    %c2_i32_18 = arith.constant 2 : i32
    %c0_i32_19 = arith.constant 0 : i32
    %c0_i32_20 = arith.constant 0 : i32
    %27 = tpu.memref_slice %arg2[%c0_i32_19, %c0_i32_20] : memref<1024x256xf32, #tpu.memory_space<any>> -> memref<1x256xf32, #tpu.memory_space<any>>
    %c2_i32_21 = arith.constant 2 : i32
    %c0_i32_22 = arith.constant 0 : i32
    %28 = tpu.memref_slice %arg4[%9, %c2_i32_21, %c0_i32_22] : memref<2x8x256xf32, #tpu.memory_space<vmem>> -> memref<1x1x256xf32, #tpu.memory_space<vmem>>
    %29 = tpu.memref_squeeze %28 : memref<1x1x256xf32, #tpu.memory_space<vmem>> -> memref<1x256xf32, #tpu.memory_space<vmem>>
    %30 = tpu.memref_slice %arg5[%9, %c2_i32_18] : memref<2x8x!tpu.dma_semaphore, #tpu.memory_space<semaphore_mem>> -> memref<1x1x!tpu.dma_semaphore, #tpu.memory_space<semaphore_mem>>
    %31 = tpu.memref_squeeze %30 : memref<1x1x!tpu.dma_semaphore, #tpu.memory_space<semaphore_mem>> -> memref<!tpu.dma_semaphore, #tpu.memory_space<semaphore_mem>>
    tpu.wait_dma2 semaphore(%31 : memref<!tpu.dma_semaphore, #tpu.memory_space<semaphore_mem>>) src(%27 : memref<1x256xf32, #tpu.memory_space<any>>) dst(%29 : memref<1x256xf32, #tpu.memory_space<vmem>>)
    %c3_i32 = arith.constant 3 : i32
    %c0_i32_23 = arith.constant 0 : i32
    %c0_i32_24 = arith.constant 0 : i32
    %32 = tpu.memref_slice %arg2[%c0_i32_23, %c0_i32_24] : memref<1024x256xf32, #tpu.memory_space<any>> -> memref<1x256xf32, #tpu.memory_space<any>>
    %c3_i32_25 = arith.constant 3 : i32
    %c0_i32_26 = arith.constant 0 : i32
    %33 = tpu.memref_slice %arg4[%9, %c3_i32_25, %c0_i32_26] : memref<2x8x256xf32, #tpu.memory_space<vmem>> -> memref<1x1x256xf32, #tpu.memory_space<vmem>>
    %34 = tpu.memref_squeeze %33 : memref<1x1x256xf32, #tpu.memory_space<vmem>> -> memref<1x256xf32, #tpu.memory_space<vmem>>
    %35 = tpu.memref_slice %arg5[%9, %c3_i32] : memref<2x8x!tpu.dma_semaphore, #tpu.memory_space<semaphore_mem>> -> memref<1x1x!tpu.dma_semaphore, #tpu.memory_space<semaphore_mem>>
    %36 = tpu.memref_squeeze %35 : memref<1x1x!tpu.dma_semaphore, #tpu.memory_space<semaphore_mem>> -> memref<!tpu.dma_semaphore, #tpu.memory_space<semaphore_mem>>
    tpu.wait_dma2 semaphore(%36 : memref<!tpu.dma_semaphore, #tpu.memory_space<semaphore_mem>>) src(%32 : memref<1x256xf32, #tpu.memory_space<any>>) dst(%34 : memref<1x256xf32, #tpu.memory_space<vmem>>)
    %c4_i32 = arith.constant 4 : i32
    %c0_i32_27 = arith.constant 0 : i32
    %c0_i32_28 = arith.constant 0 : i32
    %37 = tpu.memref_slice %arg2[%c0_i32_27, %c0_i32_28] : memref<1024x256xf32, #tpu.memory_space<any>> -> memref<1x256xf32, #tpu.memory_space<any>>
    %c4_i32_29 = arith.constant 4 : i32
    %c0_i32_30 = arith.constant 0 : i32
    %38 = tpu.memref_slice %arg4[%9, %c4_i32_29, %c0_i32_30] : memref<2x8x256xf32, #tpu.memory_space<vmem>> -> memref<1x1x256xf32, #tpu.memory_space<vmem>>
    %39 = tpu.memref_squeeze %38 : memref<1x1x256xf32, #tpu.memory_space<vmem>> -> memref<1x256xf32, #tpu.memory_space<vmem>>
    %40 = tpu.memref_slice %arg5[%9, %c4_i32] : memref<2x8x!tpu.dma_semaphore, #tpu.memory_space<semaphore_mem>> -> memref<1x1x!tpu.dma_semaphore, #tpu.memory_space<semaphore_mem>>
    %41 = tpu.memref_squeeze %40 : memref<1x1x!tpu.dma_semaphore, #tpu.memory_space<semaphore_mem>> -> memref<!tpu.dma_semaphore, #tpu.memory_space<semaphore_mem>>
    tpu.wait_dma2 semaphore(%41 : memref<!tpu.dma_semaphore, #tpu.memory_space<semaphore_mem>>) src(%37 : memref<1x256xf32, #tpu.memory_space<any>>) dst(%39 : memref<1x256xf32, #tpu.memory_space<vmem>>)
    %c5_i32 = arith.constant 5 : i32
    %c0_i32_31 = arith.constant 0 : i32
    %c0_i32_32 = arith.constant 0 : i32
    %42 = tpu.memref_slice %arg2[%c0_i32_31, %c0_i32_32] : memref<1024x256xf32, #tpu.memory_space<any>> -> memref<1x256xf32, #tpu.memory_space<any>>
    %c5_i32_33 = arith.constant 5 : i32
    %c0_i32_34 = arith.constant 0 : i32
    %43 = tpu.memref_slice %arg4[%9, %c5_i32_33, %c0_i32_34] : memref<2x8x256xf32, #tpu.memory_space<vmem>> -> memref<1x1x256xf32, #tpu.memory_space<vmem>>
    %44 = tpu.memref_squeeze %43 : memref<1x1x256xf32, #tpu.memory_space<vmem>> -> memref<1x256xf32, #tpu.memory_space<vmem>>
    %45 = tpu.memref_slice %arg5[%9, %c5_i32] : memref<2x8x!tpu.dma_semaphore, #tpu.memory_space<semaphore_mem>> -> memref<1x1x!tpu.dma_semaphore, #tpu.memory_space<semaphore_mem>>
    %46 = tpu.memref_squeeze %45 : memref<1x1x!tpu.dma_semaphore, #tpu.memory_space<semaphore_mem>> -> memref<!tpu.dma_semaphore, #tpu.memory_space<semaphore_mem>>
    tpu.wait_dma2 semaphore(%46 : memref<!tpu.dma_semaphore, #tpu.memory_space<semaphore_mem>>) src(%42 : memref<1x256xf32, #tpu.memory_space<any>>) dst(%44 : memref<1x256xf32, #tpu.memory_space<vmem>>)
    %c6_i32 = arith.constant 6 : i32
    %c0_i32_35 = arith.constant 0 : i32
    %c0_i32_36 = arith.constant 0 : i32
    %47 = tpu.memref_slice %arg2[%c0_i32_35, %c0_i32_36] : memref<1024x256xf32, #tpu.memory_space<any>> -> memref<1x256xf32, #tpu.memory_space<any>>
    %c6_i32_37 = arith.constant 6 : i32
    %c0_i32_38 = arith.constant 0 : i32
    %48 = tpu.memref_slice %arg4[%9, %c6_i32_37, %c0_i32_38] : memref<2x8x256xf32, #tpu.memory_space<vmem>> -> memref<1x1x256xf32, #tpu.memory_space<vmem>>
    %49 = tpu.memref_squeeze %48 : memref<1x1x256xf32, #tpu.memory_space<vmem>> -> memref<1x256xf32, #tpu.memory_space<vmem>>
    %50 = tpu.memref_slice %arg5[%9, %c6_i32] : memref<2x8x!tpu.dma_semaphore, #tpu.memory_space<semaphore_mem>> -> memref<1x1x!tpu.dma_semaphore, #tpu.memory_space<semaphore_mem>>
    %51 = tpu.memref_squeeze %50 : memref<1x1x!tpu.dma_semaphore, #tpu.memory_space<semaphore_mem>> -> memref<!tpu.dma_semaphore, #tpu.memory_space<semaphore_mem>>
    tpu.wait_dma2 semaphore(%51 : memref<!tpu.dma_semaphore, #tpu.memory_space<semaphore_mem>>) src(%47 : memref<1x256xf32, #tpu.memory_space<any>>) dst(%49 : memref<1x256xf32, #tpu.memory_space<vmem>>)
    %c7_i32 = arith.constant 7 : i32
    %c0_i32_39 = arith.constant 0 : i32
    %c0_i32_40 = arith.constant 0 : i32
    %52 = tpu.memref_slice %arg2[%c0_i32_39, %c0_i32_40] : memref<1024x256xf32, #tpu.memory_space<any>> -> memref<1x256xf32, #tpu.memory_space<any>>
    %c7_i32_41 = arith.constant 7 : i32
    %c0_i32_42 = arith.constant 0 : i32
    %53 = tpu.memref_slice %arg4[%9, %c7_i32_41, %c0_i32_42] : memref<2x8x256xf32, #tpu.memory_space<vmem>> -> memref<1x1x256xf32, #tpu.memory_space<vmem>>
    %54 = tpu.memref_squeeze %53 : memref<1x1x256xf32, #tpu.memory_space<vmem>> -> memref<1x256xf32, #tpu.memory_space<vmem>>
    %55 = tpu.memref_slice %arg5[%9, %c7_i32] : memref<2x8x!tpu.dma_semaphore, #tpu.memory_space<semaphore_mem>> -> memref<1x1x!tpu.dma_semaphore, #tpu.memory_space<semaphore_mem>>
    %56 = tpu.memref_squeeze %55 : memref<1x1x!tpu.dma_semaphore, #tpu.memory_space<semaphore_mem>> -> memref<!tpu.dma_semaphore, #tpu.memory_space<semaphore_mem>>
    tpu.wait_dma2 semaphore(%56 : memref<!tpu.dma_semaphore, #tpu.memory_space<semaphore_mem>>) src(%52 : memref<1x256xf32, #tpu.memory_space<any>>) dst(%54 : memref<1x256xf32, #tpu.memory_space<vmem>>)
    %57 = arith.index_cast %9 : i32 to index
    %c0 = arith.constant 0 : index
    %c0_43 = arith.constant 0 : index
    %58 = vector.load %arg4[%57, %c0, %c0_43] : memref<2x8x256xf32, #tpu.memory_space<vmem>>, vector<1x8x256xf32>
    %59 = vector.shape_cast %58 : vector<1x8x256xf32> to vector<8x256xf32>
    %c0_44 = arith.constant 0 : index
    %c0_45 = arith.constant 0 : index
    %60 = vector.load %arg3[%c0_44, %c0_45] : memref<8x256xf32, #tpu.memory_space<vmem>>, vector<8x256xf32>
    tpu.vector_store %arg3[%c0_44, %c0_45], %59 {strides = array<i32>} : memref<8x256xf32, #tpu.memory_space<vmem>>, vector<8x256xf32>,
    return
  }
  func.func @transform_1(%arg0: i32, %arg1: memref<16xi32, #tpu.memory_space<smem>>) -> (i32, i32) {
    %c0_i32 = arith.constant 0 : i32
    %c0_i32_0 = arith.constant 0 : i32
    return %arg0, %c0_i32 : i32, i32
  }
}

</mosaic_0001>

<bundles_post_ra>
// kernel: tpu_custom_call.1
= control target key start
LH: loop header
LB: loop body
LE: loop exit
PB: predicated region body
PF: predicated region fallthrough
CT: control target
= control target key end

     0   :  { %s1382_s12 = smov [#allocation5]   ;;  %s2000_s0 = inlined_call_operand.hbm [shape: s32[16], index: 0, kind: input, shape index: {}]   ;;  %s2001_s1 = inlined_call_operand.hbm [shape: f32[1024,256], index: 1, kind: input, shape index: {}]   ;;  %s2002_s2 = inlined_call_operand.hbm [shape: f32[16,256], index: 2, kind: output, shape index: {}]  }
   0x1   :  { %2025 = sst [smem:[#allocation49_spill]] %s2002_s2  ;;  %s8_s11 = sshll.u32 %s2000_s0, 4  ;;  %s9_s11 = int_to_ptr.hbm [resolvable:$true] %s8_s11 }
   0x2   :  { %11 = dma.hbm_to_smem %s9_s11, 16, %s1382_s12, [#allocation4] }
   0x3   :  { %1348 = dma.done.wait [#allocation4], 16 }
   0x4   :  { %1349 = vsyncadd [#allocation4], 4294967280 }
   0x5   :  { %14 = sfence }
   0x6   :  { %15 = vsyncpa [#allocation7], 0 }
   0x7   :  { %17 = vsyncpa [#allocation7 + $0x1], 0  ;;  %s1411_s13 = smov 0   ;;  %s1413_s14 = smov 0  }
   0x8   :  { %s1415_s15 = smov 0  }
   0x9 LB: > { %2026 = sst [smem:[#allocation42_spill]] %s1372_s13  ;;  %s686_s0 = sadd.s32 4294967295, %s1380_s15   ;;  %s1380_s15 = sphi %s1415_s15, %s2077_s15   ;;  %s1376_s14 = sphi %s1413_s14, %s2076_s14   ;;  %s1372_s13 = sphi %s1411_s13, %s2075_s13  }
   0xa   : > { %s1428_s16 = sadd.s32 1, %s1380_s15   ;;  %s29_s18 = sadd.s32 1, %s1376_s14 }
   0xb   : > { %s26_s17 = ssub.s32 %s1380_s15, %s1428_s16  ;;  %p33_p2 = scmp.eq.s32.totalorder %s1380_s15, 1 }
   0xc   : > { %p27_p0 = scmp.eq.s32.totalorder %s26_s17, 0  ;;  %p687_p1 = scmp.ne.s32.totalorder %s26_s17, 0 }
   0xd   : > { %p38_p3 = scmp.ne.s32.totalorder %s1376_s14, %s1372_s13  ;;  %p39_p5 = scmp.eq.s32.totalorder %s686_s0, 1 }
   0xe   : > { %s1437_s19 = scalar_select %p27_p0, %s1376_s14, %s29_s18  }
   0xf   : > { %p1439_p4 = por %p687_p1, %p33_p2  ;;  %p1443_p6 = por %p39_p5, %p38_p3 }
  0x10   : > { %2027 = sst [smem:[#allocation43_spill]] %s1437_s19  ;;  %p688_p7 = scmp.ge.s32.totalorder %s1380_s15, 2 }
  0x11   : > { %s2028_s20 = scalar_select %p1439_p4, 1, 0 }
  0x12   : > { %s2030_s21 = scalar_select %p1443_p6, 1, 0 }
  0x13   : > { %2029 = sst [smem:[#allocation44_spill]] %s2028_s20  ;;  %48 = sbr.rel (%p688_p7) target bundleno = 495 (0x1ef), region = 12 }
  0x14   : > { %2031 = sst [smem:[#allocation45_spill]] %s2030_s21 }
  0x18   : > { %s2003_s22 = sand.u32 1, %s1376_s14   ;;  %p810_p8 = scmp.eq.s32.totalorder %s1380_s15, 0 }
  0x19   : > { %s1451_s23 = sshll.u32 %s2003_s22, 4  ;;  %s72_s24 = sld [smem:[#allocation5]] }
  0x1a   : > { %s2004_s25 = smov [#allocation2]   ;;  %s1458_s27 = sld [smem:[#allocation5 + $0x1]] }
  0x1b   : > { %s1455_s26 = sshll.u32 %s2004_s25, 4  ;;  %s1460_s28 = sld [smem:[#allocation5 + $0x2]]  ;;  %s81_s26 = int_to_ptr.vmem [resolvable:$true] %s1455_s26 }
  0x1c   : > { %s1384_s29 = smov [#allocation2 + $0x1]   ;;  %s1385_s7 = smov [#allocation2 + $0x2]  }
  0x1d   : > { %s1462_s30 = sshll.u32 %s1384_s29, 4  ;;  %s1465_s8 = sshll.u32 %s1385_s7, 4  ;;  %s97_s30 = int_to_ptr.vmem [resolvable:$true] %s1462_s30  ;;  %s113_s8 = int_to_ptr.vmem [resolvable:$true] %s1465_s8 }
  0x1f   : > { %s73_s3 = sshrl.u32 %s72_s24, 3  ;;  %s74_s4 = sand.u32 7, %s72_s24  }
  0x20   : > { %s694_s5 = sshll.u32 %s73_s3, 4  ;;  %s87_s12 = sshrl.u32 %s1458_s27, 3 }
  0x21   : > { %s76_s6 = sadd.s32 %s694_s5, %s74_s4  ;;  %s88_s17 = sand.u32 7, %s1458_s27  }
  0x22   : > { %s77_s11 = scalar_lea.hbm %s2001_s1, %s76_s6  ;;  %s696_s18 = sshll.u32 %s87_s12, 4 }
  0x23   : > { %s78_s0 = sshll.u32 %s77_s11, 4  ;;  %s1477_s4 = scalar_lea.hbm %s2001_s1, 2048  ;;  %s79_s0 = int_to_ptr.hbm [resolvable:$true] %s78_s0 }
  0x24   : > { %s860_s29 = sshra.s32 %s79_s0, 4  ;;  %s861_s29 = int_to_ptr.hbm [resolvable:$true] %s860_s29 }
  0x25   : > { %s862_s22 = scalar_lea.hbm %s861_s29, 2  ;;  %p867_p12 = scmp.lt.s32.totalorder %s861_s29, %s2001_s1 }
  0x26   : > { %p863_p9 = scmp.ne.s32.totalorder %s861_s29, %s862_s22  ;;  %p868_p13 = scmp.lt.s32.totalorder %s1477_s4, %s862_s22 }
  0x28   : > { %p864_p10 = pnand %p863_p9, %p810_p8  ;;  %p869_p0 = por %p868_p13, %p867_p12 }
  0x2a   : > { %p865_p11 = pneg %p864_p10 }
  0x2c   : > { %p870_p1 = pnand %p869_p0, %p865_p11 }
  0x2e   : > { %873 = shalt.err (!%p870_p1)  }
  0x2f   : > { %s2006_s27 = smov 128   ;;  %s2008_s6 = smov 1  }
  0x30   : > { %771 = dma.hbm_to_vmem [thread:$0]  (%p810_p8), %s79_s0, 32, %s81_s26, [#allocation3], %s2006_s27, %s2006_s27, %s2008_s6 }
  0x31   : > { %s90_s9 = sadd.s32 %s696_s18, %s88_s17  ;;  %s103_s10 = sshrl.u32 %s1460_s28, 3 }
  0x32   : > { %s91_s12 = scalar_lea.hbm %s2001_s1, %s90_s9  ;;  %s104_s29 = sand.u32 7, %s1460_s28  }
  0x33   : > { %s94_s24 = sshll.u32 %s91_s12, 4  ;;  %s698_s3 = sshll.u32 %s103_s10, 4  ;;  %s95_s24 = int_to_ptr.hbm [resolvable:$true] %s94_s24 }
  0x34   : > { %s106_s5 = sadd.s32 %s698_s3, %s104_s29  ;;  %s888_s7 = sshra.s32 %s95_s24, 4  ;;  %s889_s7 = int_to_ptr.hbm [resolvable:$true] %s888_s7 }
  0x35   : > { %s890_s25 = scalar_lea.hbm %s889_s7, 2  ;;  %p895_p7 = scmp.lt.s32.totalorder %s889_s7, %s2001_s1 }
  0x36   : > { %p891_p2 = scmp.ne.s32.totalorder %s889_s7, %s890_s25  ;;  %p896_p9 = scmp.lt.s32.totalorder %s1477_s4, %s890_s25 }
  0x38   : > { %p892_p3 = pnand %p891_p2, %p810_p8  ;;  %p897_p10 = por %p896_p9, %p895_p7 }
  0x3a   : > { %p893_p5 = pneg %p892_p3 }
  0x3c   : > { %p898_p11 = pnand %p897_p10, %p893_p5 }
  0x3e   : > { %901 = shalt.err (!%p898_p11)  }
  0x3f   : > { %772 = dma.hbm_to_vmem [thread:$0]  (%p810_p8), %s95_s24, 32, %s97_s30, [#allocation3 + $0x1], %s2006_s27, %s2006_s27, %s2008_s6 }
  0x40   : > { %s107_s18 = scalar_lea.hbm %s2001_s1, %s106_s5  ;;  %s699_s9 = sld [smem:[#allocation5 + $0x3]] }
  0x41   : > { %s110_s25 = sshll.u32 %s107_s18, 4  ;;  %s111_s25 = int_to_ptr.hbm [resolvable:$true] %s110_s25 }
  0x42   : > { %s916_s10 = sshra.s32 %s111_s25, 4  ;;  %s917_s10 = int_to_ptr.hbm [resolvable:$true] %s916_s10 }
  0x43   : > { %s918_s22 = scalar_lea.hbm %s917_s10, 2  ;;  %p923_p1 = scmp.lt.s32.totalorder %s917_s10, %s2001_s1 }
  0x44   : > { %p919_p12 = scmp.ne.s32.totalorder %s917_s10, %s918_s22  ;;  %p924_p2 = scmp.lt.s32.totalorder %s1477_s4, %s918_s22 }
  0x46   : > { %p920_p13 = pnand %p919_p12, %p810_p8  ;;  %p925_p3 = por %p924_p2, %p923_p1 }
  0x48   : > { %p921_p0 = pneg %p920_p13 }
  0x4a   : > { %p926_p5 = pnand %p925_p3, %p921_p0 }
  0x4c   : > { %929 = shalt.err (!%p926_p5)  }
  0x4d   : > { %773 = dma.hbm_to_vmem [thread:$0]  (%p810_p8), %s111_s25, 32, %s113_s8, [#allocation3 + $0x2], %s2006_s27, %s2006_s27, %s2008_s6 }
  0x4e   : > { %s1388_s30 = smov [#allocation2 + $0x3]   ;;  %s1525_s24 = sld [smem:[#allocation5 + $0x4]] }
  0x4f   : > { %s1523_s29 = sshll.u32 %s1388_s30, 4  ;;  %s1389_s3 = smov [#allocation2 + $0x4]   ;;  %s129_s29 = int_to_ptr.vmem [resolvable:$true] %s1523_s29 }
  0x50   : > { %s1528_s5 = sshll.u32 %s1389_s3, 4  ;;  %s1530_s7 = sld [smem:[#allocation5 + $0x5]]  ;;  %s145_s5 = int_to_ptr.vmem [resolvable:$true] %s1528_s5 }
  0x51   : > { %s119_s26 = sshrl.u32 %s699_s9, 3  ;;  %s120_s0 = sand.u32 7, %s699_s9  }
  0x52   : > { %s700_s28 = sshll.u32 %s119_s26, 4 }
  0x53   : > { %s122_s8 = sadd.s32 %s700_s28, %s120_s0 }
  0x54   : > { %s123_s25 = scalar_lea.hbm %s2001_s1, %s122_s8  ;;  %s135_s10 = sshrl.u32 %s1525_s24, 3 }
  0x55   : > { %s126_s22 = sshll.u32 %s123_s25, 4  ;;  %s136_s11 = sand.u32 7, %s1525_s24   ;;  %s127_s22 = int_to_ptr.hbm [resolvable:$true] %s126_s22 }
  0x56   : > { %s702_s12 = sshll.u32 %s135_s10, 4  ;;  %s944_s30 = sshra.s32 %s127_s22, 4  ;;  %s945_s30 = int_to_ptr.hbm [resolvable:$true] %s944_s30 }
  0x57   : > { %s946_s3 = scalar_lea.hbm %s945_s30, 2  ;;  %p951_p11 = scmp.lt.s32.totalorder %s945_s30, %s2001_s1 }
  0x58   : > { %p947_p7 = scmp.ne.s32.totalorder %s945_s30, %s946_s3  ;;  %p952_p12 = scmp.lt.s32.totalorder %s1477_s4, %s946_s3 }
  0x5a   : > { %p948_p9 = pnand %p947_p7, %p810_p8  ;;  %p953_p13 = por %p952_p12, %p951_p11 }
  0x5c   : > { %p949_p10 = pneg %p948_p9 }
  0x5e   : > { %p954_p0 = pnand %p953_p13, %p949_p10 }
  0x60   : > { %957 = shalt.err (!%p954_p0)  }
  0x61   : > { %774 = dma.hbm_to_vmem [thread:$0]  (%p810_p8), %s127_s22, 32, %s129_s29, [#allocation3 + $0x3], %s2006_s27, %s2006_s27, %s2008_s6 }
  0x62   : > { %s138_s24 = sadd.s32 %s702_s12, %s136_s11  ;;  %s151_s0 = sshrl.u32 %s1530_s7, 3 }
  0x63   : > { %s139_s17 = scalar_lea.hbm %s2001_s1, %s138_s24  ;;  %s152_s18 = sand.u32 7, %s1530_s7  }
  0x64   : > { %s142_s25 = sshll.u32 %s139_s17, 4  ;;  %s704_s10 = sshll.u32 %s151_s0, 4  ;;  %s143_s25 = int_to_ptr.hbm [resolvable:$true] %s142_s25 }
  0x65   : > { %s154_s30 = sadd.s32 %s704_s10, %s152_s18  ;;  %s972_s3 = sshra.s32 %s143_s25, 4  ;;  %s973_s3 = int_to_ptr.hbm [resolvable:$true] %s972_s3 }
  0x66   : > { %s974_s9 = scalar_lea.hbm %s973_s3, 2  ;;  %p979_p5 = scmp.lt.s32.totalorder %s973_s3, %s2001_s1 }
  0x67   : > { %p975_p1 = scmp.ne.s32.totalorder %s973_s3, %s974_s9  ;;  %p980_p7 = scmp.lt.s32.totalorder %s1477_s4, %s974_s9 }
  0x69   : > { %p976_p2 = pnand %p975_p1, %p810_p8  ;;  %p981_p9 = por %p980_p7, %p979_p5 }
  0x6b   : > { %p977_p3 = pneg %p976_p2 }
  0x6d   : > { %p982_p10 = pnand %p981_p9, %p977_p3 }
  0x6f   : > { %985 = shalt.err (!%p982_p10)  }
  0x70   : > { %775 = dma.hbm_to_vmem [thread:$0]  (%p810_p8), %s143_s25, 32, %s145_s5, [#allocation3 + $0x4], %s2006_s27, %s2006_s27, %s2008_s6 }
  0x71   : > { %s155_s12 = scalar_lea.hbm %s2001_s1, %s154_s30  ;;  %s1390_s26 = smov [#allocation2 + $0x5]  }
  0x72   : > { %s160_s24 = sshll.u32 %s1390_s26, 4  ;;  %s158_s0 = sshll.u32 %s155_s12, 4  ;;  %s161_s24 = int_to_ptr.vmem [resolvable:$true] %s160_s24  ;;  %s159_s0 = int_to_ptr.hbm [resolvable:$true] %s158_s0 }
  0x73   : > { %s705_s28 = sld [smem:[#allocation5 + $0x6]]  ;;  %s1000_s8 = sshra.s32 %s159_s0, 4  ;;  %s1001_s8 = int_to_ptr.hbm [resolvable:$true] %s1000_s8 }
  0x74   : > { %s1002_s17 = scalar_lea.hbm %s1001_s8, 2  ;;  %p1007_p0 = scmp.lt.s32.totalorder %s1001_s8, %s2001_s1 }
  0x75   : > { %p1003_p11 = scmp.ne.s32.totalorder %s1001_s8, %s1002_s17  ;;  %p1008_p1 = scmp.lt.s32.totalorder %s1477_s4, %s1002_s17 }
  0x77   : > { %p1004_p12 = pnand %p1003_p11, %p810_p8  ;;  %p1009_p2 = por %p1008_p1, %p1007_p0 }
  0x79   : > { %p1005_p13 = pneg %p1004_p12 }
  0x7b   : > { %p1010_p3 = pnand %p1009_p2, %p1005_p13 }
  0x7d   : > { %1013 = shalt.err (!%p1010_p3)  }
  0x7e   : > { %776 = dma.hbm_to_vmem [thread:$0]  (%p810_p8), %s159_s0, 32, %s161_s24, [#allocation3 + $0x5], %s2006_s27, %s2006_s27, %s2008_s6 }
  0x7f   : > { %s707_s5 = sld [smem:[#allocation5 + $0x7]]  ;;  %s1391_s25 = smov [#allocation2 + $0x6]  }
  0x80   : > { %s1583_s30 = sshll.u32 %s1391_s25, 4  ;;  %s1392_s3 = smov [#allocation2 + $0x7]   ;;  %s177_s30 = int_to_ptr.vmem [resolvable:$true] %s1583_s30 }
  0x81   : > { %s1586_s9 = sshll.u32 %s1392_s3, 4  ;;  %p56_p5 = scmp.lt.s32.totalorder %s1380_s15, 0 }
  0x82   : > { %2032 = sst [smem:[#allocation46_spill]] %s1586_s9  ;;  %s167_s29 = sshrl.u32 %s705_s28, 3 }
  0x83   : > { %s168_s22 = sand.u32 7, %s705_s28   ;;  %s706_s7 = sshll.u32 %s167_s29, 4 }
  0x84   : > { %s57_s11 = ssub.s32 0, %s1380_s15  ;;  %s170_s12 = sadd.s32 %s706_s7, %s168_s22 }
  0x85   : > { %s183_s26 = sshrl.u32 %s707_s5, 3  ;;  %s171_s8 = scalar_lea.hbm %s2001_s1, %s170_s12 }
  0x86   : > { %s184_s17 = sand.u32 7, %s707_s5   ;;  %s174_s18 = sshll.u32 %s171_s8, 4  ;;  %s175_s18 = int_to_ptr.hbm [resolvable:$true] %s174_s18 }
  0x87   : > { %s708_s10 = sshll.u32 %s183_s26, 4  ;;  %s1028_s3 = sshra.s32 %s175_s18, 4  ;;  %s1029_s3 = int_to_ptr.hbm [resolvable:$true] %s1028_s3 }
  0x88   : > { %s186_s25 = sadd.s32 %s708_s10, %s184_s17  ;;  %s1030_s9 = scalar_lea.hbm %s1029_s3, 2 }
  0x89   : > { %p1031_p7 = scmp.ne.s32.totalorder %s1029_s3, %s1030_s9  ;;  %p1035_p11 = scmp.lt.s32.totalorder %s1029_s3, %s2001_s1 }
  0x8a   : > { %p1036_p12 = scmp.lt.s32.totalorder %s1477_s4, %s1030_s9 }
  0x8b   : > { %p1032_p9 = pnand %p1031_p7, %p810_p8 }
  0x8c   : > { %p1037_p13 = por %p1036_p12, %p1035_p11 }
  0x8d   : > { %p1033_p10 = pneg %p1032_p9 }
  0x8f   : > { %p1038_p0 = pnand %p1037_p13, %p1033_p10 }
  0x91   : > { %1041 = shalt.err (!%p1038_p0)  }
  0x92   : > { %777 = dma.hbm_to_vmem [thread:$0]  (%p810_p8), %s175_s18, 32, %s177_s30, [#allocation3 + $0x6], %s2006_s27, %s2006_s27, %s2008_s6 }
  0x93   : > { %s187_s7 = scalar_lea.hbm %s2001_s1, %s186_s25  ;;  %s690_s12 = smin.u32 %s1380_s15, %s57_s11 }
  0x94   : > { %s190_s9 = sshll.u32 %s187_s7, 4  ;;  %s59_s26 = sand.u32 1, %s690_s12   ;;  %s191_s9 = int_to_ptr.hbm [resolvable:$true] %s190_s9 }
  0x95   : > { %s60_s24 = ssub.s32 0, %s59_s26  ;;  %s1056_s0 = sshra.s32 %s191_s9, 4  ;;  %s1057_s0 = int_to_ptr.hbm [resolvable:$true] %s1056_s0 }
  0x96   : > { %s1058_s8 = scalar_lea.hbm %s1057_s0, 2  ;;  %p1063_p7 = scmp.lt.s32.totalorder %s1057_s0, %s2001_s1 }
  0x97   : > { %p1059_p1 = scmp.ne.s32.totalorder %s1057_s0, %s1058_s8  ;;  %p1064_p9 = scmp.lt.s32.totalorder %s1477_s4, %s1058_s8 }
  0x99   : > { %p1060_p2 = pnand %p1059_p1, %p810_p8  ;;  %p1065_p10 = por %p1064_p9, %p1063_p7 }
  0x9b   : > { %p1061_p3 = pneg %p1060_p2 }
  0x9d   : > { %p1066_p11 = pnand %p1065_p10, %p1061_p3 }
  0x9f   : > { %1069 = shalt.err (!%p1066_p11)  }
  0xa0   : > { %s2033_s30 = sld [smem:[#allocation46_spill]]  ;;  %s2079_s24 = smov (!%p56_p5, %s60_s24), %s59_s26 }
  0xa1   : > { %p692_p12 = scmp.lt.s32.totalorder %s2079_s24, 0  ;;  %s66_s18 = sadd.s32 2, %s2079_s24 }
  0xa2   : > { %p811_p13 = scmp.lt.s32.totalorder %s1428_s16, 2  ;;  %s766_s25 = sshll.u32 %s1380_s15, 3 }
  0xa3   : > { %s2081_s18 = smov (!%p692_p12, %s66_s18), %s2079_s24  ;;  %s1630_s3 = sadd.s32 8, %s766_s25 }
  0xa4   : > { %s203_s28 = ssub.s32 1, %s2081_s18  ;;  %s223_s0 = sadd.s32 1, %s1630_s3 }
  0xa5   : > { %s780_s5 = scalar_select %p811_p13, [#allocation5], [#allocation24] }
  0xa6   : > { %s2034_s11 = int_to_ptr.vmem [resolvable:$true] %s2033_s30  ;;  %s712_s7 = sshll.u32 %s203_s28, 4 }
  0xa7   : > { %778 = dma.hbm_to_vmem [thread:$0]  (%p810_p8), %s191_s9, 32, %s2034_s11, [#allocation3 + $0x7], %s2006_s27, %s2006_s27, %s2008_s6 }
  0xa8   : > { %s781_s22 = scalar_select %p811_p13, %s1630_s3, 0 }
  0xa9   : > { %s713_s12 = sshll.u32 %s203_s28, 3  ;;  %s1639_s26 = scalar_lea.vmem [#allocation2], %s712_s7 }
  0xaa   : > { %s205_s9 = sld [smem:[%s780_s5 + %s781_s22]]  ;;  %s217_s24 = sshll.u32 %s1639_s26, 4  ;;  %s1642_s24 = int_to_ptr.vmem [resolvable:$true] %s217_s24 }
  0xab   : > { %s584_s8 = scalar_lea.vmem %s1639_s26, 1 [#allocation2]  ;;  %s2083_s0 = smov (!%p811_p13, %s223_s0), 0 }
  0xac   : > { %s783_s17 = scalar_select %p811_p13, [#allocation5], [#allocation25] }
  0xad   : > { %s1652_s5 = scalar_lea.sflag [#allocation3], %s713_s12  ;;  %s1658_s6 = sshll.u32 %s584_s8, 4 }
  0xae   : > { %s1650_s25 = sld [smem:[%s783_s17 + %s2083_s0]] }
  0xaf   : > { %2035 = sst [smem:[#allocation46_spill]] %s1658_s6 }
  0xb0   : > { %s206_s10 = sshrl.u32 %s205_s9, 3  ;;  %s207_s30 = sand.u32 7, %s205_s9  }
  0xb1   : > { %s711_s11 = sshll.u32 %s206_s10, 4 }
  0xb2   : > { %s209_s28 = sadd.s32 %s711_s11, %s207_s30 }
  0xb3   : > { %s210_s27 = scalar_lea.hbm %s2001_s1, %s209_s28 }
  0xb4   : > { %s1660_s19 = sshll.u32 %s210_s27, 4  ;;  %s216_s19 = int_to_ptr.hbm [resolvable:$true] %s1660_s19 }
  0xb5   : > { %s1084_s0 = sshra.s32 %s216_s19, 4  ;;  %s1085_s0 = int_to_ptr.hbm [resolvable:$true] %s1084_s0 }
  0xb6   : > { %s1086_s12 = scalar_lea.hbm %s1085_s0, 2  ;;  %p1091_p1 = scmp.lt.s32.totalorder %s1085_s0, %s2001_s1 }
  0xb7   : > { %p1087_p8 = scmp.ne.s32.totalorder %s1085_s0, %s1086_s12  ;;  %p1092_p2 = scmp.lt.s32.totalorder %s1477_s4, %s1086_s12 }
  0xb9   : > { %p1088_p5 = pnand %p1087_p8, %p811_p13  ;;  %p1093_p3 = por %p1092_p2, %p1091_p1 }
  0xbb   : > { %p1089_p0 = pneg %p1088_p5 }
  0xbd   : > { %p1094_p7 = pnand %p1093_p3, %p1089_p0 }
  0xbf   : > { %1097 = shalt.err (!%p1094_p7)  }
  0xc0   : > { %s1098_s27 = sshra.s32 %s1642_s24, 4  ;;  %s2036_s10 = smov [#allocation2]   ;;  %s1099_s27 = int_to_ptr.vmem [resolvable:$true] %s1098_s27 }
  0xc1   : > { %s1100_s8 = scalar_lea.vmem %s1099_s27, 2  ;;  %s1677_s30 = scalar_lea.vmem %s2036_s10, 32 }
  0xc2   : > { %p1101_p9 = scmp.ne.s32.totalorder %s1099_s27, %s1100_s8  ;;  %p1105_p12 = scmp.lt.s32.totalorder %s1099_s27, [#allocation2] }
  0xc3   : > { %p1106_p8 = scmp.lt.s32.totalorder %s1677_s30, %s1100_s8 }
  0xc4   : > { %p1102_p10 = pnand %p1101_p9, %p811_p13 }
  0xc5   : > { %p1107_p5 = por %p1106_p8, %p1105_p12 }
  0xc6   : > { %p1103_p11 = pneg %p1102_p10 }
  0xc8   : > { %p1108_p6 = pnand %p1107_p5, %p1103_p11 }
  0xca   : > { %1111 = shalt.err (!%p1108_p6)  }
  0xcb   : > { %s2037_s11 = smov 1   ;;  %s2038_s28 = smov 128  }
  0xcc   : > { %782 = dma.hbm_to_vmem [thread:$0]  (%p811_p13), %s216_s19, 32, %s1642_s24, %s1652_s5, %s2038_s28, %s2038_s28, %s2037_s11 }
  0xcd   : > { %s225_s7 = sshrl.u32 %s1650_s25, 3  ;;  %s226_s0 = sand.u32 7, %s1650_s25  }
  0xce   : > { %s714_s12 = sshll.u32 %s225_s7, 4  ;;  %s593_s29 = scalar_lea.vmem %s1639_s26, 2 [#allocation2] }
  0xcf   : > { %s228_s17 = sadd.s32 %s714_s12, %s226_s0  ;;  %s1696_s22 = sshll.u32 %s593_s29, 4 }
  0xd0   : > { %s229_s9 = scalar_lea.hbm %s2001_s1, %s228_s17  ;;  %2039 = sst [smem:[#allocation47_spill]] %s1696_s22 }
  0xd1   : > { %s1698_s6 = sshll.u32 %s229_s9, 4  ;;  %s261_s19 = sadd.s32 3, %s1630_s3  ;;  %s235_s6 = int_to_ptr.hbm [resolvable:$true] %s1698_s6 }
  0xd2   : > { %s1112_s24 = sshra.s32 %s235_s6, 4  ;;  %s1113_s24 = int_to_ptr.hbm [resolvable:$true] %s1112_s24 }
  0xd3   : > { %s1114_s25 = scalar_lea.hbm %s1113_s24, 2  ;;  %p1119_p2 = scmp.lt.s32.totalorder %s1113_s24, %s2001_s1 }
  0xd4   : > { %p1115_p6 = scmp.ne.s32.totalorder %s1113_s24, %s1114_s25  ;;  %p1120_p3 = scmp.lt.s32.totalorder %s1477_s4, %s1114_s25 }
  0xd6   : > { %p1116_p0 = pnand %p1115_p6, %p811_p13  ;;  %p1121_p7 = por %p1120_p3, %p1119_p2 }
  0xd8   : > { %p1117_p1 = pneg %p1116_p0 }
  0xda   : > { %p1122_p9 = pnand %p1121_p7, %p1117_p1 }
  0xdc   : > { %1125 = shalt.err (!%p1122_p9)  }
  0xdd   : > { %s2040_s9 = sld [smem:[#allocation46_spill]] }
  0xe3   : > { %s2041_s12 = int_to_ptr.vmem [resolvable:$true] %s2040_s9 }
  0xe4   : > { %s1126_s29 = sshra.s32 %s2041_s12, 4  ;;  %s1127_s29 = int_to_ptr.vmem [resolvable:$true] %s1126_s29 }
  0xe5   : > { %s1128_s17 = scalar_lea.vmem %s1127_s29, 2  ;;  %p1133_p8 = scmp.lt.s32.totalorder %s1127_s29, [#allocation2] }
  0xe6   : > { %p1129_p10 = scmp.ne.s32.totalorder %s1127_s29, %s1128_s17  ;;  %p1134_p5 = scmp.lt.s32.totalorder %s1677_s30, %s1128_s17 }
  0xe8   : > { %p1130_p11 = pnand %p1129_p10, %p811_p13  ;;  %p1135_p6 = por %p1134_p5, %p1133_p8 }
  0xea   : > { %p1131_p12 = pneg %p1130_p11 }
  0xec   : > { %p1136_p0 = pnand %p1135_p6, %p1131_p12 }
  0xee   : > { %1139 = shalt.err (!%p1136_p0)  }
  0xef   : > { %s2042_s8 = scalar_lea.sflag %s1652_s5, 1 [#allocation3]  ;;  %s2043_s10 = smov %s2041_s12 }
  0xf0   : > { %785 = dma.hbm_to_vmem [thread:$0]  (%p811_p13), %s235_s6, 32, %s2043_s10, %s2042_s8, %s2038_s28, %s2038_s28, %s2037_s11 }
  0xf1   : > { %s786_s24 = scalar_select %p811_p13, [#allocation5], [#allocation26] }
  0xf2   : > { %s2044_s25 = sadd.s32 2, %s1630_s3  ;;  %s602_s9 = scalar_lea.vmem %s1639_s26, 3 [#allocation2] }
  0xf3   : > { %s2085_s25 = smov (!%p811_p13, %s2044_s25), 0  ;;  %s2087_s19 = smov (!%p811_p13, %s261_s19), 0 }
  0xf4   : > { %s789_s7 = scalar_select %p811_p13, [#allocation5], [#allocation27] }
  0xf5   : > { %s243_s0 = sld [smem:[%s786_s24 + %s2085_s25]]  ;;  %s1735_s29 = sshll.u32 %s602_s9, 4 }
  0xf6   : > { %2045 = sst [smem:[#allocation46_spill]] %s1735_s29  ;;  %s611_s8 = scalar_lea.vmem %s1639_s26, 4 [#allocation2] }
  0xf7   : > { %s1737_s17 = sld [smem:[%s789_s7 + %s2087_s19]]  ;;  %s1747_s9 = sshll.u32 %s611_s8, 4 }
  0xf8   : > { %s1744_s10 = scalar_select %p811_p13, [#allocation5], [#allocation28] }
  0xf9   : > { %2046 = sst [smem:[#allocation48_spill]] %s1747_s9 }
  0xfb   : > { %s244_s27 = sshrl.u32 %s243_s0, 3  ;;  %s245_s24 = sand.u32 7, %s243_s0  }
  0xfc   : > { %s717_s25 = sshll.u32 %s244_s27, 4 }
  0xfd   : > { %s247_s12 = sadd.s32 %s717_s25, %s245_s24  ;;  %s263_s13 = sshrl.u32 %s1737_s17, 3 }
  0xfe   : > { %s248_s7 = scalar_lea.hbm %s2001_s1, %s247_s12  ;;  %s264_s6 = sand.u32 7, %s1737_s17  }
  0xff   : > { %s1753_s29 = sshll.u32 %s248_s7, 4  ;;  %s720_s20 = sshll.u32 %s263_s13, 4  ;;  %s254_s29 = int_to_ptr.hbm [resolvable:$true] %s1753_s29 }
 0x100   : > { %s1140_s2 = sshra.s32 %s254_s29, 4  ;;  %s1141_s2 = int_to_ptr.hbm [resolvable:$true] %s1140_s2 }
 0x101   : > { %s1142_s0 = scalar_lea.hbm %s1141_s2, 2  ;;  %p1147_p7 = scmp.lt.s32.totalorder %s1141_s2, %s2001_s1 }
 0x102   : > { %p1143_p1 = scmp.ne.s32.totalorder %s1141_s2, %s1142_s0  ;;  %p1148_p9 = scmp.lt.s32.totalorder %s1477_s4, %s1142_s0 }
 0x104   : > { %p1144_p2 = pnand %p1143_p1, %p811_p13  ;;  %p1149_p10 = por %p1148_p9, %p1147_p7 }
 0x106   : > { %p1145_p3 = pneg %p1144_p2 }
 0x108   : > { %p1150_p11 = pnand %p1149_p10, %p1145_p3 }
 0x10a   : > { %1153 = shalt.err (!%p1150_p11)  }
 0x10b   : > { %s2047_s21 = smov %s1696_s22 }
 0x10c   : > { %s2048_s12 = int_to_ptr.vmem [resolvable:$true] %s2047_s21 }
 0x10d   : > { %s1154_s13 = sshra.s32 %s2048_s12, 4  ;;  %s1155_s13 = int_to_ptr.vmem [resolvable:$true] %s1154_s13 }
 0x10e   : > { %s1156_s24 = scalar_lea.vmem %s1155_s13, 2  ;;  %p1161_p6 = scmp.lt.s32.totalorder %s1155_s13, [#allocation2] }
 0x10f   : > { %p1157_p12 = scmp.ne.s32.totalorder %s1155_s13, %s1156_s24  ;;  %p1162_p0 = scmp.lt.s32.totalorder %s1677_s30, %s1156_s24 }
 0x111   : > { %p1158_p8 = pnand %p1157_p12, %p811_p13  ;;  %p1163_p1 = por %p1162_p0, %p1161_p6 }
 0x113   : > { %p1159_p5 = pneg %p1158_p8 }
 0x115   : > { %p1164_p2 = pnand %p1163_p1, %p1159_p5 }
 0x117   : > { %1167 = shalt.err (!%p1164_p2)  }
 0x118   : > { %s2049_s2 = scalar_lea.sflag %s1652_s5, 2 [#allocation3]  ;;  %s2050_s25 = smov %s2048_s12 }
 0x119   : > { %788 = dma.hbm_to_vmem [thread:$0]  (%p811_p13), %s254_s29, 32, %s2050_s25, %s2049_s2, %s2038_s28, %s2038_s28, %s2037_s11 }
 0x11a   : > { %s266_s19 = sadd.s32 %s720_s20, %s264_s6  ;;  %s299_s8 = sadd.s32 5, %s1630_s3 }
 0x11b   : > { %s267_s27 = scalar_lea.hbm %s2001_s1, %s266_s19  ;;  %s620_s21 = scalar_lea.vmem %s1639_s26, 5 [#allocation2] }
 0x11c   : > { %s1784_s12 = sshll.u32 %s267_s27, 4  ;;  %s273_s12 = int_to_ptr.hbm [resolvable:$true] %s1784_s12 }
 0x11d   : > { %s1168_s24 = sshra.s32 %s273_s12, 4  ;;  %s1169_s24 = int_to_ptr.hbm [resolvable:$true] %s1168_s24 }
 0x11e   : > { %s1170_s22 = scalar_lea.hbm %s1169_s24, 2  ;;  %p1175_p10 = scmp.lt.s32.totalorder %s1169_s24, %s2001_s1 }
 0x11f   : > { %p1171_p3 = scmp.ne.s32.totalorder %s1169_s24, %s1170_s22  ;;  %p1176_p11 = scmp.lt.s32.totalorder %s1477_s4, %s1170_s22 }
 0x121   : > { %p1172_p7 = pnand %p1171_p3, %p811_p13  ;;  %p1177_p12 = por %p1176_p11, %p1175_p10 }
 0x123   : > { %p1173_p9 = pneg %p1172_p7 }
 0x125   : > { %p1178_p8 = pnand %p1177_p12, %p1173_p9 }
 0x127   : > { %1181 = shalt.err (!%p1178_p8)  }
 0x128   : > { %s2051_s17 = sld [smem:[#allocation46_spill]] }
 0x12e   : > { %s2052_s6 = int_to_ptr.vmem [resolvable:$true] %s2051_s17 }
 0x12f   : > { %s1182_s2 = sshra.s32 %s2052_s6, 4  ;;  %s1183_s2 = int_to_ptr.vmem [resolvable:$true] %s1182_s2 }
 0x130   : > { %s1184_s25 = scalar_lea.vmem %s1183_s2, 2  ;;  %p1189_p1 = scmp.lt.s32.totalorder %s1183_s2, [#allocation2] }
 0x131   : > { %p1185_p5 = scmp.ne.s32.totalorder %s1183_s2, %s1184_s25  ;;  %p1190_p2 = scmp.lt.s32.totalorder %s1677_s30, %s1184_s25 }
 0x133   : > { %p1186_p6 = pnand %p1185_p5, %p811_p13  ;;  %p1191_p3 = por %p1190_p2, %p1189_p1 }
 0x135   : > { %p1187_p0 = pneg %p1186_p6 }
 0x137   : > { %p1192_p7 = pnand %p1191_p3, %p1187_p0 }
 0x139   : > { %1195 = shalt.err (!%p1192_p7)  }
 0x13a   : > { %s2053_s22 = scalar_lea.sflag %s1652_s5, 3 [#allocation3]  ;;  %s2054_s19 = smov %s2052_s6 }
 0x13b   : > { %791 = dma.hbm_to_vmem [thread:$0]  (%p811_p13), %s273_s12, 32, %s2054_s19, %s2053_s22, %s2038_s28, %s2038_s28, %s2037_s11 }
 0x13c   : > { %s2055_s7 = sadd.s32 4, %s1630_s3  ;;  %s1818_s24 = sshll.u32 %s620_s21, 4 }
 0x13d   : > { %s2089_s7 = smov (!%p811_p13, %s2055_s7), 0  ;;  %2056 = sst [smem:[#allocation47_spill]] %s1818_s24 }
 0x13e   : > { %s795_s0 = scalar_select %p811_p13, [#allocation5], [#allocation29] }
 0x13f   : > { %s281_s27 = sld [smem:[%s1744_s10 + %s2089_s7]]  ;;  %s2091_s8 = smov (!%p811_p13, %s299_s8), 0 }
 0x140   : > { %s318_s20 = sadd.s32 6, %s1630_s3  ;;  %s1826_s29 = sld [smem:[%s795_s0 + %s2091_s8]] }
 0x141   : > { %s798_s17 = scalar_select %p811_p13, [#allocation5], [#allocation30] }
 0x142   : > { %s2093_s20 = smov (!%p811_p13, %s318_s20), 0 }
 0x143   : > { %s1833_s2 = sld [smem:[%s798_s17 + %s2093_s20]] }
 0x145   : > { %s282_s6 = sshrl.u32 %s281_s27, 3  ;;  %s283_s10 = sand.u32 7, %s281_s27  }
 0x146   : > { %s723_s21 = sshll.u32 %s282_s6, 4  ;;  %s301_s0 = sshrl.u32 %s1826_s29, 3 }
 0x147   : > { %s285_s25 = sadd.s32 %s723_s21, %s283_s10  ;;  %s302_s12 = sand.u32 7, %s1826_s29  }
 0x148   : > { %s286_s8 = scalar_lea.hbm %s2001_s1, %s285_s25  ;;  %s726_s24 = sshll.u32 %s301_s0, 4 }
 0x149   : > { %s1840_s13 = sshll.u32 %s286_s8, 4  ;;  %s292_s13 = int_to_ptr.hbm [resolvable:$true] %s1840_s13 }
 0x14a   : > { %s1196_s9 = sshra.s32 %s292_s13, 4  ;;  %s1197_s9 = int_to_ptr.hbm [resolvable:$true] %s1196_s9 }
 0x14b   : > { %s1198_s27 = scalar_lea.hbm %s1197_s9, 2  ;;  %p1203_p12 = scmp.lt.s32.totalorder %s1197_s9, %s2001_s1 }
 0x14c   : > { %p1199_p9 = scmp.ne.s32.totalorder %s1197_s9, %s1198_s27  ;;  %p1204_p8 = scmp.lt.s32.totalorder %s1477_s4, %s1198_s27 }
 0x14e   : > { %p1200_p10 = pnand %p1199_p9, %p811_p13  ;;  %p1205_p5 = por %p1204_p8, %p1203_p12 }
 0x150   : > { %p1201_p11 = pneg %p1200_p10 }
 0x152   : > { %p1206_p6 = pnand %p1205_p5, %p1201_p11 }
 0x154   : > { %1209 = shalt.err (!%p1206_p6)  }
 0x155   : > { %s2057_s6 = sld [smem:[#allocation48_spill]] }
 0x15b   : > { %s2058_s10 = int_to_ptr.vmem [resolvable:$true] %s2057_s6 }
 0x15c   : > { %s1210_s21 = sshra.s32 %s2058_s10, 4  ;;  %s1211_s21 = int_to_ptr.vmem [resolvable:$true] %s1210_s21 }
 0x15d   : > { %s1212_s25 = scalar_lea.vmem %s1211_s21, 2  ;;  %p1217_p3 = scmp.lt.s32.totalorder %s1211_s21, [#allocation2] }
 0x15e   : > { %p1213_p0 = scmp.ne.s32.totalorder %s1211_s21, %s1212_s25  ;;  %p1218_p7 = scmp.lt.s32.totalorder %s1677_s30, %s1212_s25 }
 0x160   : > { %p1214_p1 = pnand %p1213_p0, %p811_p13  ;;  %p1219_p9 = por %p1218_p7, %p1217_p3 }
 0x162   : > { %p1215_p2 = pneg %p1214_p1 }
 0x164   : > { %p1220_p10 = pnand %p1219_p9, %p1215_p2 }
 0x166   : > { %1223 = shalt.err (!%p1220_p10)  }
 0x167   : > { %s2059_s9 = scalar_lea.sflag %s1652_s5, 4 [#allocation3]  ;;  %s2060_s19 = smov %s2058_s10 }
 0x168   : > { %794 = dma.hbm_to_vmem [thread:$0]  (%p811_p13), %s292_s13, 32, %s2060_s19, %s2059_s9, %s2038_s28, %s2038_s28, %s2037_s11 }
 0x169   : > { %s304_s7 = sadd.s32 %s726_s24, %s302_s12  ;;  %s320_s8 = sshrl.u32 %s1833_s2, 3 }
 0x16a   : > { %s305_s20 = scalar_lea.hbm %s2001_s1, %s304_s7  ;;  %s321_s17 = sand.u32 7, %s1833_s2  }
 0x16b   : > { %s1871_s10 = sshll.u32 %s305_s20, 4  ;;  %s729_s21 = sshll.u32 %s320_s8, 4  ;;  %s311_s10 = int_to_ptr.hbm [resolvable:$true] %s1871_s10 }
 0x16c   : > { %s323_s6 = sadd.s32 %s729_s21, %s321_s17  ;;  %s1224_s25 = sshra.s32 %s311_s10, 4  ;;  %s1225_s25 = int_to_ptr.hbm [resolvable:$true] %s1224_s25 }
 0x16d   : > { %s1226_s22 = scalar_lea.hbm %s1225_s25, 2  ;;  %p1231_p5 = scmp.lt.s32.totalorder %s1225_s25, %s2001_s1 }
 0x16e   : > { %p1227_p11 = scmp.ne.s32.totalorder %s1225_s25, %s1226_s22  ;;  %p1232_p6 = scmp.lt.s32.totalorder %s1477_s4, %s1226_s22 }
 0x170   : > { %p1228_p12 = pnand %p1227_p11, %p811_p13  ;;  %p1233_p0 = por %p1232_p6, %p1231_p5 }
 0x172   : > { %p1229_p8 = pneg %p1228_p12 }
 0x174   : > { %p1234_p1 = pnand %p1233_p0, %p1229_p8 }
 0x176   : > { %1237 = shalt.err (!%p1234_p1)  }
 0x177   : > { %s2061_s29 = sld [smem:[#allocation47_spill]] }
 0x17d   : > { %s2062_s12 = int_to_ptr.vmem [resolvable:$true] %s2061_s29 }
 0x17e   : > { %s1238_s2 = sshra.s32 %s2062_s12, 4  ;;  %s1239_s2 = int_to_ptr.vmem [resolvable:$true] %s1238_s2 }
 0x17f   : > { %s1240_s9 = scalar_lea.vmem %s1239_s2, 2  ;;  %p1245_p9 = scmp.lt.s32.totalorder %s1239_s2, [#allocation2] }
 0x180   : > { %p1241_p2 = scmp.ne.s32.totalorder %s1239_s2, %s1240_s9  ;;  %p1246_p10 = scmp.lt.s32.totalorder %s1677_s30, %s1240_s9 }
 0x182   : > { %p1242_p3 = pnand %p1241_p2, %p811_p13  ;;  %p1247_p11 = por %p1246_p10, %p1245_p9 }
 0x184   : > { %p1243_p7 = pneg %p1242_p3 }
 0x186   : > { %p1248_p12 = pnand %p1247_p11, %p1243_p7 }
 0x188   : > { %1251 = shalt.err (!%p1248_p12)  }
 0x189   : > { %s2063_s22 = scalar_lea.sflag %s1652_s5, 5 [#allocation3]  ;;  %s2064_s19 = smov %s2062_s12 }
 0x18a   : > { %797 = dma.hbm_to_vmem [thread:$0]  (%p811_p13), %s311_s10, 32, %s2064_s19, %s2063_s22, %s2038_s28, %s2038_s28, %s2037_s11 }
 0x18b   : > { %s324_s0 = scalar_lea.hbm %s2001_s1, %s323_s6  ;;  %s2065_s27 = scalar_lea.vmem %s1639_s26, 6 [#allocation2] }
 0x18c   : > { %s1899_s20 = sshll.u32 %s2065_s27, 4  ;;  %s1901_s17 = sshll.u32 %s324_s0, 4  ;;  %s332_s20 = int_to_ptr.vmem [resolvable:$true] %s1899_s20  ;;  %s330_s17 = int_to_ptr.hbm [resolvable:$true] %s1901_s17 }
 0x18d   : > { %s337_s21 = sadd.s32 7, %s1630_s3  ;;  %s1252_s25 = sshra.s32 %s330_s17, 4  ;;  %s1253_s25 = int_to_ptr.hbm [resolvable:$true] %s1252_s25 }
 0x18e   : > { %s1254_s13 = scalar_lea.hbm %s1253_s25, 2  ;;  %p1259_p0 = scmp.lt.s32.totalorder %s1253_s25, %s2001_s1 }
 0x18f   : > { %p1255_p8 = scmp.ne.s32.totalorder %s1253_s25, %s1254_s13  ;;  %p1260_p1 = scmp.lt.s32.totalorder %s1477_s4, %s1254_s13 }
 0x191   : > { %p1256_p5 = pnand %p1255_p8, %p811_p13  ;;  %p1261_p2 = por %p1260_p1, %p1259_p0 }
 0x193   : > { %p1257_p6 = pneg %p1256_p5 }
 0x195   : > { %p1262_p3 = pnand %p1261_p2, %p1257_p6 }
 0x197   : > { %1265 = shalt.err (!%p1262_p3)  }
 0x198   : > { %s1266_s3 = sshra.s32 %s332_s20, 4  ;;  %s1267_s3 = int_to_ptr.vmem [resolvable:$true] %s1266_s3 }
 0x199   : > { %s1268_s6 = scalar_lea.vmem %s1267_s3, 2  ;;  %p1273_p11 = scmp.lt.s32.totalorder %s1267_s3, [#allocation2] }
 0x19a   : > { %p1269_p7 = scmp.ne.s32.totalorder %s1267_s3, %s1268_s6  ;;  %p1274_p12 = scmp.lt.s32.totalorder %s1677_s30, %s1268_s6 }
 0x19c   : > { %p1270_p9 = pnand %p1269_p7, %p811_p13  ;;  %p1275_p8 = por %p1274_p12, %p1273_p11 }
 0x19e   : > { %p1271_p10 = pneg %p1270_p9 }
 0x1a0   : > { %p1276_p5 = pnand %p1275_p8, %p1271_p10 }
 0x1a2   : > { %1279 = shalt.err (!%p1276_p5)  }
 0x1a3   : > { %s2066_s29 = scalar_lea.sflag %s1652_s5, 6 [#allocation3]  ;;  %s2095_s21 = smov (!%p811_p13, %s337_s21), 0 }
 0x1a4   : > { %800 = dma.hbm_to_vmem [thread:$0]  (%p811_p13), %s330_s17, 32, %s332_s20, %s2066_s29, %s2038_s28, %s2038_s28, %s2037_s11 }
 0x1a5   : > { %s801_s12 = scalar_select %p811_p13, [#allocation5], [#allocation31] }
 0x1a6   : > { %s638_s9 = scalar_lea.vmem %s1639_s26, 7 [#allocation2]  ;;  %s641_s27 = scalar_lea.sflag %s1652_s5, 7 [#allocation3] }
 0x1a7   : > { %s338_s2 = sld [smem:[%s801_s12 + %s2095_s21]]  ;;  %s1931_s22 = sshll.u32 %s638_s9, 4  ;;  %s351_s22 = int_to_ptr.vmem [resolvable:$true] %s1931_s22 }
 0x1ad   : > { %s339_s19 = sshrl.u32 %s338_s2, 3  ;;  %s340_s7 = sand.u32 7, %s338_s2  }
 0x1ae   : > { %s732_s8 = sshll.u32 %s339_s19, 4 }
 0x1af   : > { %s342_s0 = sadd.s32 %s732_s8, %s340_s7 }
 0x1b0   : > { %s343_s20 = scalar_lea.hbm %s2001_s1, %s342_s0 }
 0x1b1   : > { %s1938_s17 = sshll.u32 %s343_s20, 4  ;;  %s349_s17 = int_to_ptr.hbm [resolvable:$true] %s1938_s17 }
 0x1b2   : > { %s1280_s21 = sshra.s32 %s349_s17, 4  ;;  %s1281_s21 = int_to_ptr.hbm [resolvable:$true] %s1280_s21 }
 0x1b3   : > { %s1282_s26 = scalar_lea.hbm %s1281_s21, 2  ;;  %p1287_p2 = scmp.lt.s32.totalorder %s1281_s21, %s2001_s1 }
 0x1b4   : > { %p1283_p6 = scmp.ne.s32.totalorder %s1281_s21, %s1282_s26  ;;  %p1288_p3 = scmp.lt.s32.totalorder %s1477_s4, %s1282_s26 }
 0x1b6   : > { %p1284_p0 = pnand %p1283_p6, %p811_p13  ;;  %p1289_p7 = por %p1288_p3, %p1287_p2 }
 0x1b8   : > { %p1285_p1 = pneg %p1284_p0 }
 0x1ba   : > { %p1290_p9 = pnand %p1289_p7, %p1285_p1 }
 0x1bc   : > { %1293 = shalt.err (!%p1290_p9)  }
 0x1bd   : > { %s1294_s3 = sshra.s32 %s351_s22, 4  ;;  %s1295_s3 = int_to_ptr.vmem [resolvable:$true] %s1294_s3 }
 0x1be   : > { %s1296_s6 = scalar_lea.vmem %s1295_s3, 2  ;;  %p1301_p8 = scmp.lt.s32.totalorder %s1295_s3, [#allocation2] }
 0x1bf   : > { %p1297_p10 = scmp.ne.s32.totalorder %s1295_s3, %s1296_s6  ;;  %p1302_p5 = scmp.lt.s32.totalorder %s1677_s30, %s1296_s6 }
 0x1c1   : > { %p1298_p11 = pnand %p1297_p10, %p811_p13  ;;  %p1303_p6 = por %p1302_p5, %p1301_p8 }
 0x1c3   : > { %p1299_p12 = pneg %p1298_p11 }
 0x1c5   : > { %p1304_p0 = pnand %p1303_p6, %p1299_p12 }
 0x1c7   : > { %1307 = shalt.err (!%p1304_p0)  }
 0x1c8   : > { %803 = dma.hbm_to_vmem [thread:$0]  (%p811_p13), %s349_s17, 32, %s351_s22, %s641_s27, %s2038_s28, %s2038_s28, %s2037_s11 }
 0x1c9   : > { %s1962_s4 = scalar_lea.vmem [#allocation6], %s1451_s23  ;;  %s2067_s29 = sshll.u32 %s2081_s18, 3 }
 0x1ca   : > { %s357_s12 = scalar_lea.sflag [#allocation3], %s2067_s29 }
 0x1cb   : > { %1350 = dma.done.wait %s357_s12, 32 }
 0x1cc   : > { %1351 = vsyncadd %s357_s12, 4294967264  ;;  %s646_s30 = scalar_lea.sflag %s357_s12, 1 [#allocation3] }
 0x1cd   : > { %1352 = dma.done.wait %s646_s30, 32 }
 0x1ce   : > { %1353 = vsyncadd %s646_s30, 4294967264  ;;  %s649_s2 = scalar_lea.sflag %s357_s12, 2 [#allocation3] }
 0x1cf   : > { %1354 = dma.done.wait %s649_s2, 32 }
 0x1d0   : > { %1355 = vsyncadd %s649_s2, 4294967264  ;;  %s652_s9 = scalar_lea.sflag %s357_s12, 3 [#allocation3] }
 0x1d1   : > { %1356 = dma.done.wait %s652_s9, 32 }
 0x1d2   : > { %1357 = vsyncadd %s652_s9, 4294967264  ;;  %s655_s5 = scalar_lea.sflag %s357_s12, 4 [#allocation3] }
 0x1d3   : > { %1358 = dma.done.wait %s655_s5, 32 }
 0x1d4   : > { %1359 = vsyncadd %s655_s5, 4294967264  ;;  %s658_s19 = scalar_lea.sflag %s357_s12, 5 [#allocation3] }
 0x1d5   : > { %1360 = dma.done.wait %s658_s19, 32 }
 0x1d6   : > { %1361 = vsyncadd %s658_s19, 4294967264  ;;  %s661_s23 = scalar_lea.sflag %s357_s12, 6 [#allocation3] }
 0x1d7   : > { %1362 = dma.done.wait %s661_s23, 32 }
 0x1d8   : > { %1363 = vsyncadd %s661_s23, 4294967264  ;;  %s664_s11 = scalar_lea.sflag %s357_s12, 7 [#allocation3] }
 0x1d9   : > { %1364 = dma.done.wait %s664_s11, 32 }
 0x1da   : > { %1365 = vsyncadd %s664_s11, 4294967264  ;;  %s768_s28 = sshll.u32 %s2081_s18, 4  ;;  %s769_s22 = sshll.u32 %s1380_s15, 4 }
 0x1db   : > { %s2068_s0 = sld [smem:[#allocation49_spill]]  ;;  %s410_s13 = sshll.u32 %s1962_s4, 4  ;;  %s411_s13 = int_to_ptr.vmem [resolvable:$true] %s410_s13 }
 0x1dc   : > { %s391_s17 = scalar_lea.vmem [#allocation2], %s768_s28  ;;  %s2070_s21 = sand.u32 1, %s1376_s14  }
 0x1dd   : > { %v392_v0 = vld [vmem:[%s391_s17] sm:$0xff]  ;;  %v393_v1 = vld [vmem:[%s391_s17 + $0x8] sm:$0xff]  ;;  %s397_s26 = scalar_lea.sflag [#allocation7], %s2070_s21 }
 0x1de   : > { %394 = vst [vmem:[%s1962_s4] sm:$0xff] %v392_v0 }
 0x1df   : > { %395 = vst [vmem:[%s1962_s4 + $0x8] sm:$0xff] %v393_v1 }
 0x1e1   : > { %s408_s25 = scalar_lea.hbm %s2068_s0, %s769_s22  ;;  %s1328_s6 = scalar_lea.hbm %s2068_s0, 32 }
 0x1e2   : > { %s412_s20 = sshll.u32 %s408_s25, 4  ;;  %s413_s20 = int_to_ptr.hbm [resolvable:$true] %s412_s20 }
 0x1e3   : > { %s1322_s10 = sshra.s32 %s413_s20, 4  ;;  %s1323_s10 = int_to_ptr.hbm [resolvable:$true] %s1322_s10 }
 0x1e4   : > { %s1324_s18 = scalar_lea.hbm %s1323_s10, 16  ;;  %p1329_p3 = scmp.lt.s32.totalorder %s1323_s10, %s2068_s0 }
 0x1e5   : > { %p1325_p13 = scmp.ne.s32.totalorder %s1323_s10, %s1324_s18  ;;  %p1330_p7 = scmp.lt.s32.totalorder %s1328_s6, %s1324_s18 }
 0x1e7   : > { %p1326_p1 = pnand %p1325_p13, %p1439_p4  ;;  %p1331_p9 = por %p1330_p7, %p1329_p3 }
 0x1e9   : > { %p1327_p2 = pneg %p1326_p1 }
 0x1eb   : > { %p1332_p10 = pnand %p1331_p9, %p1327_p2 }
 0x1ed   : > { %1335 = shalt.err (!%p1332_p10)
}
 0x1ee   : > { %804 = dma.vmem_to_hbm [thread:$0]  (%p1439_p4), %s411_s13, 256, %s413_s20, %s397_s26  }
 0x1ef PF: > { %s2071_s4 = sld [smem:[#allocation42_spill]]  ;;  %p812_p11 = scmp.ge.s32.totalorder %s1380_s15, 1 }
 0x1f0   : > { %s2072_s30 = sld [smem:[#allocation45_spill]] }
 0x1f5   : > { %s424_s2 = sand.u32 1, %s2071_s4  }
 0x1f6   : > { %p2073_p12 = scmp.ne.s32.totalorder %s2072_s30, 0  ;;  %s425_s9 = scalar_lea.sflag [#allocation7], %s424_s2 }
 0x1f8   : > { %p807_p8 = pnand %p812_p11, %p2073_p12 }
 0x1fa   : > { %p808_p5 = pneg %p807_p8 }
 0x1fc   : > { %1367 = dma.done.wait (%p808_p5), %s425_s9, 256  }
 0x1fd   : > { %1369 = vsyncadd (%p808_p5), %s425_s9, 4294967040  ;;  %s2074_s5 = sld [smem:[#allocation43_spill]]  ;;  %p20_p6 = scmp.ge.s32.totalorder %s1428_s16, 3  }
 0x1fe   : > { %s2075_s13 = smov %s1376_s14  ;;  %s2077_s15 = smov %s1428_s16 }
 0x1ff   :  { %22 = sbr.rel (!%p20_p6) target bundleno = 9 (0x9), region = 122 }
 0x203   : > { %s2076_s14 = smov %s2074_s5 }
 0x204   :  { %431 = vsyncpa [#allocation7], 1 }
 0x205   :  { %433 = vsyncpa [#allocation7 + $0x1], 1 }
 0x206   :  { %434 = vsyncmov [#allocation3] }
 0x209   :  { %s435_s15 = vpop.sfrf %434 }
 0x20a   :  { %p750_p4 = scmp.ne.s32.totalorder %s435_s15, 0 }
 0x20c   :  { %439 = shalt.err (%p750_p4)  }
 0x20d   :  { %441 = vsyncmov [#allocation3 + $0x1] }
 0x210   :  { %s442_s19 = vpop.sfrf %441 }
 0x211   :  { %p751_p0 = scmp.ne.s32.totalorder %s442_s19, 0 }
 0x213   :  { %446 = shalt.err (%p751_p0)  }
 0x214   :  { %448 = vsyncmov [#allocation3 + $0x2] }
 0x217   :  { %s449_s23 = vpop.sfrf %448 }
 0x218   :  { %p752_p13 = scmp.ne.s32.totalorder %s449_s23, 0 }
 0x21a   :  { %453 = shalt.err (%p752_p13)  }
 0x21b   :  { %455 = vsyncmov [#allocation3 + $0x3] }
 0x21e   :  { %s456_s11 = vpop.sfrf %455 }
 0x21f   :  { %p753_p1 = scmp.ne.s32.totalorder %s456_s11, 0 }
 0x221   :  { %460 = shalt.err (%p753_p1)  }
 0x222   :  { %462 = vsyncmov [#allocation3 + $0x4] }
 0x225   :  { %s463_s16 = vpop.sfrf %462 }
 0x226   :  { %p754_p2 = scmp.ne.s32.totalorder %s463_s16, 0 }
 0x228   :  { %467 = shalt.err (%p754_p2)  }
 0x229   :  { %469 = vsyncmov [#allocation3 + $0x5] }
 0x22c   :  { %s470_s1 = vpop.sfrf %469 }
 0x22d   :  { %p755_p3 = scmp.ne.s32.totalorder %s470_s1, 0 }
 0x22f   :  { %474 = shalt.err (%p755_p3)  }
 0x230   :  { %476 = vsyncmov [#allocation3 + $0x6] }
 0x233   :  { %s477_s14 = vpop.sfrf %476 }
 0x234   :  { %p756_p7 = scmp.ne.s32.totalorder %s477_s14, 0 }
 0x236   :  { %481 = shalt.err (%p756_p7)  }
 0x237   :  { %483 = vsyncmov [#allocation3 + $0x7] }
 0x23a   :  { %s484_s28 = vpop.sfrf %483 }
 0x23b   :  { %p757_p9 = scmp.ne.s32.totalorder %s484_s28, 0 }
 0x23d   :  { %488 = shalt.err (%p757_p9)  }
 0x23e   :  { %490 = vsyncmov [#allocation3 + $0x8] }
 0x241   :  { %s491_s22 = vpop.sfrf %490 }
 0x242   :  { %p758_p10 = scmp.ne.s32.totalorder %s491_s22, 0 }
 0x244   :  { %495 = shalt.err (%p758_p10)  }
 0x245   :  { %497 = vsyncmov [#allocation3 + $0x9] }
 0x248   :  { %s498_s7 = vpop.sfrf %497 }
 0x249   :  { %p759_p11 = scmp.ne.s32.totalorder %s498_s7, 0 }
 0x24b   :  { %502 = shalt.err (%p759_p11)  }
 0x24c   :  { %504 = vsyncmov [#allocation3 + $0xa] }
 0x24f   :  { %s505_s8 = vpop.sfrf %504 }
 0x250   :  { %p760_p12 = scmp.ne.s32.totalorder %s505_s8, 0 }
 0x252   :  { %509 = shalt.err (%p760_p12)  }
 0x253   :  { %511 = vsyncmov [#allocation3 + $0xb] }
 0x256   :  { %s512_s0 = vpop.sfrf %511 }
 0x257   :  { %p761_p8 = scmp.ne.s32.totalorder %s512_s0, 0 }
 0x259   :  { %516 = shalt.err (%p761_p8)  }
 0x25a   :  { %518 = vsyncmov [#allocation3 + $0xc] }
 0x25d   :  { %s519_s27 = vpop.sfrf %518 }
 0x25e   :  { %p762_p5 = scmp.ne.s32.totalorder %s519_s27, 0 }
 0x260   :  { %523 = shalt.err (%p762_p5)  }
 0x261   :  { %525 = vsyncmov [#allocation3 + $0xd] }
 0x264   :  { %s526_s25 = vpop.sfrf %525 }
 0x265   :  { %p763_p6 = scmp.ne.s32.totalorder %s526_s25, 0 }
 0x267   :  { %530 = shalt.err (%p763_p6)  }
 0x268   :  { %532 = vsyncmov [#allocation3 + $0xe] }
 0x26b   :  { %s533_s13 = vpop.sfrf %532 }
 0x26c   :  { %p764_p4 = scmp.ne.s32.totalorder %s533_s13, 0 }
 0x26e   :  { %537 = shalt.err (%p764_p4)  }
 0x26f   :  { %539 = vsyncmov [#allocation3 + $0xf] }
 0x272   :  { %s540_s20 = vpop.sfrf %539 }
 0x273   :  { %p765_p0 = scmp.ne.s32.totalorder %s540_s20, 0 }
 0x275   :  { %544 = shalt.err (%p765_p0)  }

</bundles_post_ra>
